<compile_context>
chip_gen: v6e
topology: v6e:2x2x1
jax: 0.10.0
libtpu: 0.0.40
codegen_flags: <defaults>
</compile_context>

<pallas_src>
import functools
import math

import jax
import jax.numpy as jnp
from jax.experimental import pallas as pl
from jax.experimental.pallas import tpu as pltpu

_LANE = 128


def _round_up(x, m):
    return ((x + m - 1) // m) * m


def _cdiv(a, b):
    return -(-a // b)


def _vmem_capacity_bytes():
    """Physical VMEM of the local TPU generation (conservative fallback)."""
    try:
        info = pltpu.get_tpu_info()
        cap = getattr(info, "vmem_capacity_bytes", None)
        if cap:
            return int(cap)
    except Exception:
        pass
    return 64 * 1024 * 1024  # v7x-sized conservative default


def _make_conv_kernel(*, tile_oh, ow, k, tile_cout, cout_real, activation,
                      kkcin, kkcin_p, has_scale, mm_dtype):
    """Kernel body with static shape constants closed over.

    Grid = (N*num_row_tiles, num_cout_tiles).  Per grid step:
      1. (c == 0) build the lane-dense (rows, kkcin_p) im2col patch from the
         auto-pipelined halo'd row window into a VMEM scratch (reused by every
         Cout tile of this row tile).
      2. One MXU matmul (rows, kkcin_p) x (kkcin_p, tile_cout), f32 accumulate.
      3. Per-channel affine (bias or folded eval-mode BN) + activation, then a
         lane+sublane-dense flat (rows, tile_cout) store.
    """
    rows = tile_oh * ow
    kk_pad = kkcin_p - kkcin

    def kernel(xwin_ref, w_ref, scale_ref, shift_ref, o_ref, patch_ref):
        c = pl.program_id(1)

        # im2col is invariant in the cout-tile axis: build it once per row tile.
        @pl.when(c == 0)
        def _build_patch():
            xw = xwin_ref[...]                                 # (win_rows, Wp, Cin)
            taps = [xw[kh:kh + tile_oh, kw:kw + ow, :]
                    for kh in range(k) for kw in range(k)]
            if kk_pad:
                taps.append(jnp.zeros((tile_oh, ow, kk_pad), mm_dtype))
            patch_ref[...] = jnp.concatenate(taps, axis=-1).reshape(rows, kkcin_p)

        acc = jnp.dot(patch_ref[...], w_ref[...],
                      preferred_element_type=jnp.float32)       # (rows, tile_cout)

        # Per-channel affine: bias-only path skips the multiply (VALU saving).
        if has_scale:
            y = acc * scale_ref[...] + shift_ref[...]
        else:
            y = acc + shift_ref[...]

        if activation == 'relu':
            y = jnp.maximum(y, 0.0)
        elif activation == 'gelu':
            y = jax.nn.gelu(y, approximate=False)               # torch GELU default (erf)
        elif activation == 'tanh':
            y = jnp.tanh(y)
        elif activation == 'sigmoid':
            y = jax.nn.sigmoid(y)
        elif activation == 'softmax':
            # torch.nn.Softmax() on an NCHW tensor picks dim=1 (channels) ==
            # last axis here.  Softmax forces a single Cout tile (asserted on
            # host), so mask the padded channel lanes and normalize with an
            # EUP reciprocal.
            col = jax.lax.broadcasted_iota(jnp.int32, (rows, tile_cout), 1)
            y = jnp.where(col < cout_real, y, -jnp.inf)
            m = jnp.max(y, axis=-1, keepdims=True)
            e = jnp.exp(y - m)
            s = jnp.sum(e, axis=-1, keepdims=True)
            y = e * pl.reciprocal(s, approx=True)
        # 'none' -> identity

        o_ref[...] = y.astype(o_ref.dtype)

    return kernel


def _select_tiles(*, oh, ow, wp, cin, k, kkcin_p, cout_p, mm_isz, out_isz,
                  activation, budget):
    """Pick (tile_oh, tile_cout) so the full working set fits `budget`.

    rows = tile_oh*ow is kept a multiple of 8 where possible (sublane-dense
    patch/output); the widest feasible Cout tile is preferred so small weights
    stay VMEM-resident (constant block index -> single DMA).
    """
    oh_step = 8 // math.gcd(ow, 8)

    def footprint(t_oh, t_cout):
        rows = t_oh * ow
        win_rows = t_oh + k - 1
        fp = 2 * win_rows * wp * cin * mm_isz        # window double-buffer
        fp += rows * kkcin_p * mm_isz                # im2col patch scratch
        fp += 2 * kkcin_p * t_cout * mm_isz          # weight double-buffer
        fp += 2 * rows * t_cout * out_isz            # output double-buffer
        fp += 2 * rows * t_cout * 4                  # f32 acc + epilogue temps
        fp += 4 * t_cout * 4 * 2                     # scale/shift buffers
        return fp

    if activation == 'softmax':
        cout_cands = [cout_p]                        # channel softmax: one tile
    else:
        cout_cands = sorted({c for c in (cout_p, 256, _LANE)
                             if c <= cout_p and cout_p % c == 0}, reverse=True)

    top = _round_up(oh, oh_step)

    def max_tile_oh(t_cout):
        t = top
        while t > oh_step and footprint(t, t_cout) > budget:
            t -= oh_step
        while t > 1 and footprint(t, t_cout) > budget:
            t -= 1
        return max(t, 1)

    # Prefer the widest cout tile that still allows a reasonably deep matmul.
    choice = None
    for t_cout in cout_cands:
        t_oh = max_tile_oh(t_cout)
        choice = (t_cout, t_oh)
        if t_oh * ow >= min(256, oh * ow):
            break
    tile_cout, t_max = choice

    # Among feasible (multiple-of-oh_step) tile_oh values, minimize the number
    # of row tiles first, then the padded-row waste.
    best = None
    t = oh_step
    while t <= t_max:
        num_r = _cdiv(oh, t)
        key = (num_r, num_r * t - oh)
        if best is None or key < best[0]:
            best = (key, t)
        t += oh_step
    tile_oh = best[1] if best is not None else t_max

    return tile_oh, tile_cout, footprint(tile_oh, tile_cout)


def _conv_forward(x_nchw, w2d, scale, shift, *, k, pad, activation, cout,
                  use_bf16, has_scale):
    mm_dtype = jnp.bfloat16 if use_bf16 else jnp.float32
    out_dtype = jnp.bfloat16 if use_bf16 else jnp.float32

    x = jnp.transpose(x_nchw, (0, 2, 3, 1)).astype(mm_dtype)    # NCHW -> NHWC
    if pad:
        x = jnp.pad(x, ((0, 0), (pad, pad), (pad, pad), (0, 0)))
    n, hp, wp, cin = x.shape
    oh = hp - k + 1
    ow = wp - k + 1
    kkcin = k * k * cin
    kkcin_p, cout_p = w2d.shape
    w2d = w2d.astype(mm_dtype)

    mm_isz = jnp.dtype(mm_dtype).itemsize
    out_isz = jnp.dtype(out_dtype).itemsize

    # Generation-aware VMEM budget (v5e/v6e: 128 MiB -> 64 MiB budget,
    # v7x: 64 MiB -> 32 MiB budget).
    cap = _vmem_capacity_bytes()
    budget = max(16 * 1024 * 1024, min(cap // 2, 64 * 1024 * 1024))

    tile_oh, tile_cout, fp = _select_tiles(
        oh=oh, ow=ow, wp=wp, cin=cin, k=k, kkcin_p=kkcin_p, cout_p=cout_p,
        mm_isz=mm_isz, out_isz=out_isz, activation=activation, budget=budget)

    rows = tile_oh * ow
    num_r = _cdiv(oh, tile_oh)
    oh_pad = num_r * tile_oh
    win_rows = tile_oh + k - 1
    num_c = cout_p // tile_cout
    if activation == 'softmax':
        assert num_c == 1, "channel softmax requires a single Cout tile"

    # Extra zero rows so every halo'd row window is in bounds; the matching
    # output rows are sliced off below.
    extra_rows = (oh_pad + k - 1) - hp
    if extra_rows > 0:
        x = jnp.pad(x, ((0, 0), (0, extra_rows), (0, 0), (0, 0)))

    # Materialize the overlapped row windows so BlockSpec auto-pipelines
    # (double-buffers / prefetches) them -- no blocking in-kernel DMA.
    row_idx = (jnp.arange(num_r) * tile_oh)[:, None] + jnp.arange(win_rows)[None, :]
    windows = x[:, row_idx].reshape(n * num_r, win_rows, wp, cin)

    nb = n * num_r                                    # flattened (N, row_tiles):
    grid = (nb, num_c)                                # better megacore sharding

    kernel_fn = _make_conv_kernel(
        tile_oh=tile_oh, ow=ow, k=k, tile_cout=tile_cout, cout_real=cout,
        activation=activation, kkcin=kkcin, kkcin_p=kkcin_p,
        has_scale=has_scale, mm_dtype=mm_dtype)

    vmem_limit = int(min(cap - cap // 8, max(2 * fp, 32 * 1024 * 1024)))

    out = pl.pallas_call(
        kernel_fn,
        out_shape=jax.ShapeDtypeStruct((nb, rows, cout_p), out_dtype),
        grid_spec=pltpu.PrefetchScalarGridSpec(
            num_scalar_prefetch=0,
            grid=grid,
            in_specs=[
                # Halo'd row window: block index depends only on b -> re-DMA'd
                # only when the row tile changes.
                pl.BlockSpec((None, win_rows, wp, cin), lambda b, c: (b, 0, 0, 0)),
                # Weight block: constant index when tile_cout == cout_p
                # (small weights stay resident).
                pl.BlockSpec((kkcin_p, tile_cout), lambda b, c: (0, c)),
                pl.BlockSpec((1, tile_cout), lambda b, c: (0, c)),
                pl.BlockSpec((1, tile_cout), lambda b, c: (0, c)),
            ],
            out_specs=pl.BlockSpec((None, rows, tile_cout), lambda b, c: (b, 0, c)),
            scratch_shapes=[pltpu.VMEM((rows, kkcin_p), mm_dtype)],  # im2col patch
        ),
        compiler_params=pltpu.CompilerParams(
            dimension_semantics=("parallel", "arbitrary"),
            vmem_limit_bytes=vmem_limit),
    )(windows, w2d, scale, shift)

    out = out.reshape(n, oh_pad, ow, cout_p)[:, :oh, :, :cout]  # drop padding
    return jnp.transpose(out, (0, 3, 1, 2))                     # NHWC -> NCHW


class Conv2d:
    """JAX/Pallas port of the PyTorch `Conv2d` wrapper module.

    conv (stride=1) -> optional eval-mode BatchNorm2d -> activation.
    """

    def __init__(self, prev_channels, channels, flags='', kernel=3, stride=1,
                 padding='valid', *, key, use_bf16=False):
        activation = 'none'
        batchnorm = False
        for token in flags.lower().split(','):
            if token in ['relu', 'gelu', 'tanh', 'sigmoid', 'softmax', 'none']:
                activation = token
            if token in ['bn', 'batchnorm', 'batchnormalization']:
                batchnorm = True
        self.activation = activation
        self.batchnorm = batchnorm
        self.kernel = kernel
        self.stride = stride
        self.pad = 0 if padding == 'valid' else (kernel - 1) // 2
        self.cin = prev_channels
        self.cout = channels
        self.use_bf16 = use_bf16

        # TODO(synk): stride > 1 not implemented in the kernel (module default stride=1).
        assert stride == 1, "only stride=1 is supported"

        # Deterministic init mimicking torch.nn.Conv2d uniform(-b, b), b=1/sqrt(fan_in).
        wkey, bkey = jax.random.split(key)
        fan_in = prev_channels * kernel * kernel
        bound = 1.0 / (fan_in ** 0.5)
        # OIHW (torch layout) kept for the reference check; kernel uses the
        # HWIO-flattened (K*K*Cin, Cout) matrix padded to 128-multiples on both
        # the contraction and Cout axes.
        self.w_oihw = jax.random.uniform(
            wkey, (channels, prev_channels, kernel, kernel),
            minval=-bound, maxval=bound, dtype=jnp.float32)
        w_hwio = jnp.transpose(self.w_oihw, (2, 3, 1, 0))
        kkcin = kernel * kernel * prev_channels
        w2d = w_hwio.reshape(kkcin, channels)
        self.kkcin_p = _round_up(kkcin, _LANE)
        self.cout_p = _round_up(channels, _LANE)
        self.w2d = jnp.pad(w2d, ((0, self.kkcin_p - kkcin),
                                 (0, self.cout_p - channels)))

        if batchnorm:
            self.bias = None
            # BatchNorm2d params at init: gamma=1, beta=0, running stats 0/1.
            self.bn_gamma = jnp.ones((channels,), jnp.float32)
            self.bn_beta = jnp.zeros((channels,), jnp.float32)
            self.bn_mean = jnp.zeros((channels,), jnp.float32)
            self.bn_var = jnp.ones((channels,), jnp.float32)
            self.bn_eps = 1e-5
            # TODO(synk): BN is eval-mode (running stats); training-mode batch
            # statistics are not computed in the kernel.
        else:
            self.bias = jax.random.uniform(
                bkey, (channels,), minval=-bound, maxval=bound, dtype=jnp.float32)

        self._forward = jax.jit(functools.partial(
            _conv_forward, k=kernel, pad=self.pad, activation=activation,
            cout=channels, use_bf16=use_bf16, has_scale=batchnorm))

    def _affine(self):
        if self.batchnorm:
            scale = self.bn_gamma / jnp.sqrt(self.bn_var + self.bn_eps)
            shift = self.bn_beta - self.bn_mean * scale
        else:
            scale = jnp.ones((self.cout,), jnp.float32)
            shift = self.bias
        pad_c = self.cout_p - self.cout
        scale = jnp.pad(scale, (0, pad_c), constant_values=1.0).reshape(1, self.cout_p)
        shift = jnp.pad(shift, (0, pad_c)).reshape(1, self.cout_p)
        return scale, shift

    def __call__(self, x_nchw):
        scale, shift = self._affine()
        return self._forward(x_nchw, self.w2d, scale, shift)


if __name__ == "__main__":
    key = jax.random.PRNGKey(0)
    pkey, pkey2, xkey = jax.random.split(key, 3)

    N, Cin, H, W = 2, 4, 16, 16
    Cout = 8
    x = jax.random.normal(xkey, (N, Cin, H, W), dtype=jnp.float32)

    # 1) Default semantics: flags='' -> conv bias, no BN, no activation, 'valid'.
    layer = Conv2d(Cin, Cout, flags='', kernel=3, padding='valid', key=pkey)
    out = jax.block_until_ready(layer(x))
    assert out.shape == (N, Cout, H - 2, W - 2), out.shape
    ref = jax.lax.conv_general_dilated(
        x, layer.w_oihw, window_strides=(1, 1), padding='VALID',
        dimension_numbers=('NCHW', 'OIHW', 'NCHW'),
    ) + layer.bias[None, :, None, None]
    assert jnp.allclose(out, ref, atol=1e-4, rtol=1e-4), \
        float(jnp.max(jnp.abs(out - ref)))

    # 2) Eval-mode BN + relu + 'same' padding.
    layer_bn = Conv2d(Cin, Cout, flags='relu,bn', kernel=3, padding='same',
                      key=pkey2)
    out_bn = jax.block_until_ready(layer_bn(x))
    assert out_bn.shape == (N, Cout, H, W), out_bn.shape
    conv_bn = jax.lax.conv_general_dilated(
        x, layer_bn.w_oihw, window_strides=(1, 1), padding=((1, 1), (1, 1)),
        dimension_numbers=('NCHW', 'OIHW', 'NCHW'))
    scale = layer_bn.bn_gamma / jnp.sqrt(layer_bn.bn_var + layer_bn.bn_eps)
    shift = layer_bn.bn_beta - layer_bn.bn_mean * scale
    ref_bn = jnp.maximum(conv_bn * scale[None, :, None, None]
                         + shift[None, :, None, None], 0.0)
    assert jnp.allclose(out_bn, ref_bn, atol=1e-4, rtol=1e-4), \
        float(jnp.max(jnp.abs(out_bn - ref_bn)))

    # 3) Channel softmax (torch.nn.Softmax() picks dim=1 on NCHW), 'same' pad.
    layer_sm = Conv2d(Cin, Cout, flags='softmax', kernel=3, padding='same',
                      key=pkey2)
    out_sm = jax.block_until_ready(layer_sm(x))
    conv_sm = jax.lax.conv_general_dilated(
        x, layer_sm.w_oihw, window_strides=(1, 1), padding=((1, 1), (1, 1)),
        dimension_numbers=('NCHW', 'OIHW', 'NCHW'),
    ) + layer_sm.bias[None, :, None, None]
    ref_sm = jax.nn.softmax(conv_sm, axis=1)
    assert jnp.allclose(out_sm, ref_sm, atol=5e-3, rtol=5e-3), \
        float(jnp.max(jnp.abs(out_sm - ref_sm)))

    # 4) Optional bf16 MXU operand + bf16 output path, looser tolerance.
    layer_bf16 = Conv2d(Cin, Cout, flags='', kernel=3, padding='valid',
                        key=pkey, use_bf16=True)
    out_bf16 = jax.block_until_ready(layer_bf16(x))
    assert jnp.allclose(out_bf16.astype(jnp.float32), ref, atol=1e-1, rtol=1e-1), \
        float(jnp.max(jnp.abs(out_bf16.astype(jnp.float32) - ref)))

    print("KERNEL_OK")
</pallas_src>

<mosaic_0001>
module attributes {stable_mosaic.version = 11 : i64} {
  func.func @kernel(%arg0: i32, %arg1: i32, %arg2: memref<1x18x16x4xf32, #tpu.memory_space<vmem>>, %arg3: memref<128x128xf32, #tpu.memory_space<vmem>>, %arg4: memref<1x128xf32, #tpu.memory_space<vmem>>, %arg5: memref<1x128xf32, #tpu.memory_space<vmem>>, %arg6: memref<1x224x128xf32, #tpu.memory_space<vmem>>, %arg7: memref<224x128xf32, #tpu.memory_space<vmem>>) attributes {dimension_semantics = [#tpu.dimension_semantics<parallel>, #tpu.dimension_semantics<arbitrary>], iteration_bounds = array<i64: 2, 1>, scalar_prefetch = 0 : i64, scratch_operands = 1 : i64, tpu.core_type = #tpu.core_type<tc>, window_params = [{transform_indices = @transform_0, window_bounds = array<i64: 1, 18, 16, 4>}, {transform_indices = @transform_1, window_bounds = array<i64: 128, 128>}, {transform_indices = @transform_2, window_bounds = array<i64: 1, 128>}, {transform_indices = @transform_3, window_bounds = array<i64: 1, 128>}, {transform_indices = @transform_4, window_bounds = array<i64: 1, 224, 128>}]} {
    %c0_i32 = arith.constant 0 : i32
    %0 = arith.cmpi eq, %arg1, %c0_i32 : i32
    %1 = arith.extui %0 : i1 to i32
    %c0_i32_0 = arith.constant 0 : i32
    %2 = arith.cmpi ne, %1, %c0_i32_0 : i32
    scf.if %2 {
      %c0_9 = arith.constant 0 : index
      %c0_10 = arith.constant 0 : index
      %c0_11 = arith.constant 0 : index
      %c0_12 = arith.constant 0 : index
      %12 = vector.load %arg2[%c0_9, %c0_10, %c0_11, %c0_12] : memref<1x18x16x4xf32, #tpu.memory_space<vmem>>, vector<1x18x16x4xf32>
      %13 = vector.shape_cast %12 : vector<1x18x16x4xf32> to vector<18x16x4xf32>
      %14 = vector.extract_strided_slice %13 {offsets = [0, 0, 0], sizes = [16, 14, 4], strides = [1, 1, 1]} : vector<18x16x4xf32> to vector<16x14x4xf32>
      %15 = vector.extract_strided_slice %13 {offsets = [0, 1, 0], sizes = [16, 14, 4], strides = [1, 1, 1]} : vector<18x16x4xf32> to vector<16x14x4xf32>
      %16 = vector.extract_strided_slice %13 {offsets = [0, 2, 0], sizes = [16, 14, 4], strides = [1, 1, 1]} : vector<18x16x4xf32> to vector<16x14x4xf32>
      %17 = vector.extract_strided_slice %13 {offsets = [1, 0, 0], sizes = [16, 14, 4], strides = [1, 1, 1]} : vector<18x16x4xf32> to vector<16x14x4xf32>
      %18 = vector.extract_strided_slice %13 {offsets = [1, 1, 0], sizes = [16, 14, 4], strides = [1, 1, 1]} : vector<18x16x4xf32> to vector<16x14x4xf32>
      %19 = vector.extract_strided_slice %13 {offsets = [1, 2, 0], sizes = [16, 14, 4], strides = [1, 1, 1]} : vector<18x16x4xf32> to vector<16x14x4xf32>
      %20 = vector.extract_strided_slice %13 {offsets = [2, 0, 0], sizes = [16, 14, 4], strides = [1, 1, 1]} : vector<18x16x4xf32> to vector<16x14x4xf32>
      %21 = vector.extract_strided_slice %13 {offsets = [2, 1, 0], sizes = [16, 14, 4], strides = [1, 1, 1]} : vector<18x16x4xf32> to vector<16x14x4xf32>
      %22 = vector.extract_strided_slice %13 {offsets = [2, 2, 0], sizes = [16, 14, 4], strides = [1, 1, 1]} : vector<18x16x4xf32> to vector<16x14x4xf32>
      %cst_13 = arith.constant 0.000000e+00 : f32
      %23 = vector.broadcast %cst_13 : f32 to vector<16x14x92xf32>
      %24 = tpu.concatenate %14, %15, %16, %17, %18, %19, %20, %21, %22, %23 in 2 : vector<16x14x4xf32>, vector<16x14x4xf32>, vector<16x14x4xf32>, vector<16x14x4xf32>, vector<16x14x4xf32>, vector<16x14x4xf32>, vector<16x14x4xf32>, vector<16x14x4xf32>, vector<16x14x4xf32>, vector<16x14x92xf32> -> vector<16x14x128xf32>
      %25 = vector.shape_cast %24 : vector<16x14x128xf32> to vector<224x128xf32>
      %c0_14 = arith.constant 0 : index
      %c0_15 = arith.constant 0 : index
      %26 = vector.load %arg7[%c0_14, %c0_15] : memref<224x128xf32, #tpu.memory_space<vmem>>, vector<224x128xf32>
      tpu.vector_store %arg7[%c0_14, %c0_15], %25 {strides = array<i32>} : memref<224x128xf32, #tpu.memory_space<vmem>>, vector<224x128xf32>,
    } else {
    }
    %c0 = arith.constant 0 : index
    %c0_1 = arith.constant 0 : index
    %3 = vector.load %arg7[%c0, %c0_1] : memref<224x128xf32, #tpu.memory_space<vmem>>, vector<224x128xf32>
    %c0_2 = arith.constant 0 : index
    %c0_3 = arith.constant 0 : index
    %4 = vector.load %arg3[%c0_2, %c0_3] : memref<128x128xf32, #tpu.memory_space<vmem>>, vector<128x128xf32>
    %cst = arith.constant dense<0.000000e+00> : vector<224x128xf32>
    %5 = tpu.matmul %3, %4, %cst {dimension_numbers = #tpu.dot_dimension_numbers<[1], [0], [0], [1], [0, 0, 1, 1], [], []>} : vector<224x128xf32>, vector<128x128xf32>, vector<224x128xf32> -> vector<224x128xf32>
    %c0_4 = arith.constant 0 : index
    %c0_5 = arith.constant 0 : index
    %6 = vector.load %arg5[%c0_4, %c0_5] : memref<1x128xf32, #tpu.memory_space<vmem>>, vector<1x128xf32>
    %7 = vector.broadcast %6 : vector<1x128xf32> to vector<224x128xf32>
    %8 = arith.addf %5, %7 : vector<224x128xf32>
    %c0_6 = arith.constant 0 : index
    %c0_7 = arith.constant 0 : index
    %c0_8 = arith.constant 0 : index
    %9 = vector.load %arg6[%c0_6, %c0_7, %c0_8] : memref<1x224x128xf32, #tpu.memory_space<vmem>>, vector<1x224x128xf32>
    %10 = vector.shape_cast %9 : vector<1x224x128xf32> to vector<224x128xf32>
    %11 = vector.shape_cast %8 : vector<224x128xf32> to vector<1x224x128xf32>
    tpu.vector_store %arg6[%c0_6, %c0_7, %c0_8], %11 {strides = array<i32>} : memref<1x224x128xf32, #tpu.memory_space<vmem>>, vector<1x224x128xf32>,
    return
  }
  func.func @transform_0(%arg0: i32, %arg1: i32) -> (i32, i32, i32, i32) {
    %c0_i32 = arith.constant 0 : i32
    %c0_i32_0 = arith.constant 0 : i32
    %c0_i32_1 = arith.constant 0 : i32
    %c0_i32_2 = arith.constant 0 : i32
    return %arg0, %c0_i32, %c0_i32_0, %c0_i32_1 : i32, i32, i32, i32
  }
  func.func @transform_1(%arg0: i32, %arg1: i32) -> (i32, i32) {
    %c0_i32 = arith.constant 0 : i32
    %c0_i32_0 = arith.constant 0 : i32
    return %c0_i32, %arg1 : i32, i32
  }
  func.func @transform_2(%arg0: i32, %arg1: i32) -> (i32, i32) {
    %c0_i32 = arith.constant 0 : i32
    %c0_i32_0 = arith.constant 0 : i32
    return %c0_i32, %arg1 : i32, i32
  }
  func.func @transform_3(%arg0: i32, %arg1: i32) -> (i32, i32) {
    %c0_i32 = arith.constant 0 : i32
    %c0_i32_0 = arith.constant 0 : i32
    return %c0_i32, %arg1 : i32, i32
  }
  func.func @transform_4(%arg0: i32, %arg1: i32) -> (i32, i32, i32) {
    %c0_i32 = arith.constant 0 : i32
    %c0_i32_0 = arith.constant 0 : i32
    return %arg0, %c0_i32, %arg1 : i32, i32, i32
  }
}

</mosaic_0001>

<bundles_post_ra>
// kernel: _conv_forward.1
= control target key start
LH: loop header
LB: loop body
LE: loop exit
PB: predicated region body
PF: predicated region fallthrough
CT: control target
= control target key end

     0   :  { %s3284_s15 = smov 0   ;;  %s3286_s16 = smov 0   ;;  %s5284_s0 = inlined_call_operand.vmem [shape: f32[2,18,16,4], index: 0, kind: input, shape index: {}]   ;;  %s5285_s1 = inlined_call_operand.vmem [shape: f32[128,128], index: 1, kind: input, shape index: {}]   ;;  %s5286_s2 = inlined_call_operand.vmem [shape: f32[1,128], index: 2, kind: input, shape index: {}]   ;;  %s5287_s3 = inlined_call_operand.vmem [shape: f32[1,128], index: 3, kind: input, shape index: {}]   ;;  %s5288_s4 = inlined_call_operand.vmem [shape: f32[2,224,128], index: 4, kind: output, shape index: {}]  }
   0x1   :  { %s3288_s17 = smov 0  }
   0x2 LB: > { %s26_s2 = sadd.s32 1, %s3244_s16  ;;  %p3014_p0 = scmp.ge.s32.totalorder %s3248_s17, 1  ;;  %s3248_s17 = sphi %s3288_s17, %s14_s17   ;;  %s3244_s16 = sphi %s3286_s16, %s5542_s16   ;;  %s3240_s15 = sphi %s3284_s15, %s5541_s15  }
   0x3   : > { %p28_p1 = scmp.ge.s32.totalorder %s26_s2, 2  ;;  %p201_p2 = scmp.lt.s32.totalorder %s3248_s17, 3 }
   0x5   : > { %s5544_s2 = smov (%p28_p1, %s26_s2), 0  ;;  %p202_p3 = pnand %p3014_p0, %p201_p2 }
   0x7   : > { %205 = sbr.rel (%p202_p3) target bundleno = 855 (0x357), region = 36 }
   0xc   : > { %p240_p4 = scmp.lt.s32.totalorder %s3240_s15, 1  ;;  %vm335_vm0 = vcmask 1046528   ;;  %s3250_s22 = smov 4   ;;  %vm480_vm1 = vcmask 1045504   ;;  %vm1217_vm2 = vcmask 31744   ;;  %vm1250_vm3 = vcmask 64512  }
   0xd   : > { %s3251_s23 = smov 8   ;;  %s3252_s24 = smov 12   ;;  %vm1283_vm4 = vcmask 97280   ;;  %vm1316_vm5 = vcmask 130048   ;;  %vm1349_vm6 = vcmask 162816   ;;  %vm1382_vm7 = vcmask 195584  }
   0xe   : > { %s5546_s15 = smov (!%p240_p4, %s3240_s15), 1  ;;  %s3253_s25 = smov 16   ;;  %vm1415_vm8 = vcmask 228352   ;;  %vm1448_vm9 = vcmask 261120   ;;  %vm1481_vm10 = vcmask 293888  }
   0xf   : > { %s3170_s18 = smul.u32 288, %s5546_s15  ;;  %s3254_s26 = smov 20  }
  0x10   : > { %s3255_s27 = smov 24   ;;  %s3256_s28 = smov 28  }
  0x11   : > { %s3308_s21 = scalar_lea.vmem %s5284_s0, %s3170_s18  ;;  %s3257_s29 = smov 32  }
  0x12   : > { %v3311_v0 = vld [vmem:[%s3308_s21 + $0x18] sm:$0xff]  ;;  %v3314_v1 = vld [vmem:[%s3308_s21 + $0x8] sm:$0xff]  ;;  %v3324_v5 = vld [vmem:[%s3308_s21] sm:$0xff] }
  0x13   : > { %v3317_v2 = vld [vmem:[%s3308_s21 + $0x28] sm:$0xff]  ;;  %v3320_v3 = vrot.slane %v3311_v0, 1  ;;  %v337_v4 = vrot.slane %v3314_v1, 1  ;;  %v3327_v6 = vld [vmem:[%s3308_s21 + $0x10] sm:$0xff]  ;;  %v3330_v7 = vld [vmem:[%s3308_s21 + $0x20] sm:$0xff]  ;;  %v336_v8 = vrot.slane %v3324_v5, 1 }
  0x14   : > { %5383 = vst [vmem:[#allocation3_spill] sm:$0xff] %v3317_v2  ;;  %v3337_v9 = vrot.slane %v3317_v2, 1  ;;  %v339_v11 = vrot.slane %v3327_v6, 1  ;;  %v342_v12 = vrot.slane %v3330_v7, 1  ;;  %v3343_v13 = vld [vmem:[%s3308_s21 + $0x38] sm:$0xff]  ;;  %v3346_v14 = vld [vmem:[%s3308_s21 + $0x30] sm:$0xff] }
  0x15   : > { %390 = vrot.lane.b32.xlu1 %v3320_v3, %s3250_s22  ;;  %386 = vrot.lane.b32.xlu0 %v337_v4, %s3250_s22  ;;  %v338_v10 = vsel %vm335_vm0, %v336_v8, %v337_v4  ;;  %v3360_v17 = vrot.slane %v3343_v13, 1  ;;  %v345_v18 = vrot.slane %v3346_v14, 1  ;;  %v3364_v19 = vld [vmem:[%s3308_s21 + $0x48] sm:$0xff]  ;;  %v3367_v20 = vld [vmem:[%s3308_s21 + $0x40] sm:$0xff] }
  0x16   : > { %v3353_v15 = vsel %vm335_vm0, %v339_v11, %v3320_v3  ;;  %v3357_v16 = vsel %vm335_vm0, %v342_v12, %v3337_v9  ;;  %v3378_v22 = vrot.slane %v3364_v19, 1  ;;  %v348_v23 = vrot.slane %v3367_v20, 1  ;;  %v3382_v24 = vld [vmem:[%s3308_s21 + $0x58] sm:$0xff]  ;;  %v3385_v25 = vld [vmem:[%s3308_s21 + $0x50] sm:$0xff]  ;;  %v3400_v29 = vld [vmem:[%s3308_s21 + $0x68] sm:$0xff] }
  0x17   : > { %v3375_v21 = vsel %vm335_vm0, %v345_v18, %v3360_v17  ;;  %v3396_v27 = vrot.slane %v3382_v24, 1  ;;  %v351_v28 = vrot.slane %v3385_v25, 1  ;;  %v3403_v30 = vld [vmem:[%s3308_s21 + $0x60] sm:$0xff]  ;;  %v3414_v32 = vrot.slane %v3400_v29, 1  ;;  %v3418_v34 = vld [vmem:[%s3308_s21 + $0x78] sm:$0xff]  ;;  %v3421_v35 = vld [vmem:[%s3308_s21 + $0x70] sm:$0xff] }
  0x18   : > { %v3393_v26 = vsel %vm335_vm0, %v348_v23, %v3378_v22  ;;  %v354_v33 = vrot.slane %v3403_v30, 1  ;;  %v3432_v37 = vrot.slane %v3418_v34, 1  ;;  %v357_v38 = vrot.slane %v3421_v35, 1  ;;  %v3436_v39 = vld [vmem:[%s3308_s21 + $0x88] sm:$0xff]  ;;  %v3439_v40 = vld [vmem:[%s3308_s21 + $0x80] sm:$0xff]  ;;  %v3454_v44 = vld [vmem:[%s3308_s21 + $0x98] sm:$0xff] }
  0x19   : > { %394 = vrot.lane.b32.xlu1 %v3337_v9, %s3250_s22  ;;  %384 = vrot.lane.b32.xlu0 %v338_v10, %s3250_s22  ;;  %v3411_v31 = vsel %vm335_vm0, %v351_v28, %v3396_v27  ;;  %5384 = vst [vmem:[#allocation4_spill] sm:$0xff] %v3414_v32  ;;  %v3450_v42 = vrot.slane %v3436_v39, 1  ;;  %v360_v43 = vrot.slane %v3439_v40, 1  ;;  %v3457_v45 = vld [vmem:[%s3308_s21 + $0x90] sm:$0xff]  ;;  %v3468_v47 = vrot.slane %v3454_v44, 1  ;;  %v3472_v49 = vld [vmem:[%s3308_s21 + $0xa8] sm:$0xff] }
  0x1a   : > { %v3429_v36 = vsel %vm335_vm0, %v354_v33, %v3414_v32  ;;  %5385 = vst [vmem:[#allocation5_spill] sm:$0xff] %v3432_v37  ;;  %v3447_v41 = vsel %vm335_vm0, %v357_v38, %v3432_v37  ;;  %v363_v48 = vrot.slane %v3457_v45, 1  ;;  %v3475_v50 = vld [vmem:[%s3308_s21 + $0xa0] sm:$0xff]  ;;  %v3486_v52 = vrot.slane %v3472_v49, 1  ;;  %v3490_v54 = vld [vmem:[%s3308_s21 + $0xb8] sm:$0xff]  ;;  %v3493_v55 = vld [vmem:[%s3308_s21 + $0xb0] sm:$0xff] }
  0x1b   : > { %5386 = vst [vmem:[#allocation6_spill] sm:$0xff] %v3447_v41  ;;  %5387 = vst [vmem:[#allocation7_spill] sm:$0xff] %v3450_v42  ;;  %v3465_v46 = vsel %vm335_vm0, %v360_v43, %v3450_v42  ;;  %v366_v53 = vrot.slane %v3475_v50, 1  ;;  %v3504_v57 = vrot.slane %v3490_v54, 1  ;;  %v369_v58 = vrot.slane %v3493_v55, 1  ;;  %v3508_v59 = vld [vmem:[%s3308_s21 + $0xc8] sm:$0xff] }
  0x1c   : > { %5388 = vst [vmem:[#allocation8_spill] sm:$0xff] %v3465_v46  ;;  %v3483_v51 = vsel %vm335_vm0, %v363_v48, %v3468_v47  ;;  %5389 = vst [vmem:[#allocation9_spill] sm:$0xff] %v3486_v52  ;;  %v3511_v60 = vld [vmem:[%s3308_s21 + $0xc0] sm:$0xff]  ;;  %v3522_v62 = vrot.slane %v3508_v59, 1  ;;  %v3526_v4 = vld [vmem:[%s3308_s21 + $0xd8] sm:$0xff] }
  0x1d   : > { %388 = vrot.lane.b32.xlu1 %v3353_v15, %s3250_s22  ;;  %392 = vrot.lane.b32.xlu0 %v3357_v16, %s3250_s22  ;;  %v3501_v56 = vsel %vm335_vm0, %v366_v53, %v3486_v52  ;;  %5391 = vst [vmem:[#allocation11_spill] sm:$0xff] %v3504_v57  ;;  %v3519_v61 = vsel %vm335_vm0, %v369_v58, %v3504_v57  ;;  %v372_v63 = vrot.slane %v3511_v60, 1  ;;  %5394 = vst [vmem:[#allocation14_spill] sm:$0xff] %v3526_v4  ;;  %v3529_v8 = vld [vmem:[%s3308_s21 + $0xd0] sm:$0xff]  ;;  %v3544_v18 = vld [vmem:[%s3308_s21 + $0xe8] sm:$0xff] }
  0x1e   : > { %5390 = vst [vmem:[#allocation10_spill] sm:$0xff] %v3501_v56  ;;  %5392 = vst [vmem:[#allocation12_spill] sm:$0xff] %v3519_v61  ;;  %v3540_v11 = vrot.slane %v3526_v4, 1  ;;  %v375_v12 = vrot.slane %v3529_v8, 1  ;;  %v3547_v23 = vld [vmem:[%s3308_s21 + $0xe0] sm:$0xff]  ;;  %v3558_v33 = vrot.slane %v3544_v18, 1 }
  0x1f   : > { %5393 = vst [vmem:[#allocation13_spill] sm:$0xff] %v3522_v62  ;;  %5395 = vst [vmem:[#allocation15_spill] sm:$0xff] %v3529_v8  ;;  %v3537_v10 = vsel %vm335_vm0, %v372_v63, %v3522_v62  ;;  %v378_v38 = vrot.slane %v3547_v23, 1  ;;  %v3562_v43 = vld [vmem:[%s3308_s21 + $0xf8] sm:$0xff]  ;;  %v3565_v48 = vld [vmem:[%s3308_s21 + $0xf0] sm:$0xff] }
  0x20   : > { %5396 = vst [vmem:[#allocation16_spill] sm:$0xff] %v3537_v10  ;;  %5397 = vst [vmem:[#allocation17_spill] sm:$0xff] %v3540_v11  ;;  %v3555_v28 = vsel %vm335_vm0, %v375_v12, %v3540_v11  ;;  %v3576_v58 = vrot.slane %v3562_v43, 1  ;;  %v381_v63 = vrot.slane %v3565_v48, 1 }
  0x21   : > { %398 = vrot.lane.b32.xlu1 %v3360_v17, %s3250_s22  ;;  %396 = vrot.lane.b32.xlu0 %v3375_v21, %s3250_s22  ;;  %5398 = vst [vmem:[#allocation18_spill] sm:$0xff] %v3547_v23  ;;  %5399 = vst [vmem:[#allocation19_spill] sm:$0xff] %v3555_v28  ;;  %v3573_v53 = vsel %vm335_vm0, %v378_v38, %v3558_v33  ;;  %v481_v38 = vrot.slane %v3324_v5, 2  ;;  %v3605_v5 = vrot.slane %v3317_v2, 2 }
  0x22   : > { %5400 = vst [vmem:[#allocation20_spill] sm:$0xff] %v3558_v33  ;;  %5401 = vst [vmem:[#allocation21_spill] sm:$0xff] %v3573_v53  ;;  %v3585_v12 = vsel %vm335_vm0, %v381_v63, %v3576_v58  ;;  %v487_v63 = vrot.slane %v3330_v7, 2 }
  0x23   : > { %5402 = vst [vmem:[#allocation22_spill] sm:$0xff] %v3576_v58  ;;  %5403 = vst [vmem:[#allocation23_spill] sm:$0xff] %v3585_v12 }
  0x24   : > { %5405 = vst [vmem:[#allocation25_spill] sm:$0xff] %v3605_v5 }
  0x25   : > { %402 = vrot.lane.b32.xlu1 %v3378_v22, %s3250_s22  ;;  %400 = vrot.lane.b32.xlu0 %v3393_v26, %s3250_s22 }
  0x29   : > { %406 = vrot.lane.b32.xlu1 %v3396_v27, %s3250_s22  ;;  %404 = vrot.lane.b32.xlu0 %v3411_v31, %s3250_s22 }
  0x2d   : > { %410 = vrot.lane.b32.xlu1 %v3414_v32, %s3250_s22  ;;  %408 = vrot.lane.b32.xlu0 %v3429_v36, %s3250_s22 }
  0x31   : > { %414 = vrot.lane.b32.xlu1 %v3432_v37, %s3250_s22  ;;  %412 = vrot.lane.b32.xlu0 %v3447_v41, %s3250_s22  ;;  %v3595_v37 = vrot.slane %v3311_v0, 2  ;;  %v3641_v41 = vrot.slane %v3382_v24, 2 }
  0x33   : > { %5404 = vst [vmem:[#allocation24_spill] sm:$0xff] %v3595_v37  ;;  %5411 = vst [vmem:[#allocation31_spill] sm:$0xff] %v3641_v41 }
  0x35   : > { %418 = vrot.lane.b32.xlu1 %v3450_v42, %s3250_s22  ;;  %416 = vrot.lane.b32.xlu0 %v3465_v46, %s3250_s22  ;;  %v482_v42 = vrot.slane %v3314_v1, 2 }
  0x37   : > { %v483_v46 = vsel %vm480_vm1, %v481_v38, %v482_v42 }
  0x39   : > { %422 = vrot.lane.b32.xlu1 %v3468_v47, %s3250_s22  ;;  %420 = vrot.lane.b32.xlu0 %v3483_v51, %s3250_s22 }
  0x3d   : > { %426 = vrot.lane.b32.xlu1 %v3486_v52, %s3250_s22  ;;  %424 = vrot.lane.b32.xlu0 %v3501_v56, %s3250_s22 }
  0x41   : > { %430 = vrot.lane.b32.xlu1 %v3504_v57, %s3250_s22  ;;  %428 = vrot.lane.b32.xlu0 %v3519_v61, %s3250_s22 }
  0x45   : > { %434 = vrot.lane.b32.xlu1 %v3522_v62, %s3250_s22  ;;  %432 = vrot.lane.b32.xlu0 %v3537_v10, %s3250_s22  ;;  %v3749_v10 = vrot.slane %v3544_v18, 2 }
  0x47   : > { %5428 = vst [vmem:[#allocation48_spill] sm:$0xff] %v3749_v10 }
  0x49   : > { %438 = vrot.lane.b32.xlu1 %v3540_v11, %s3250_s22  ;;  %436 = vrot.lane.b32.xlu0 %v3555_v28, %s3250_s22  ;;  %v3653_v11 = vrot.slane %v3400_v29, 2  ;;  %v3725_v28 = vrot.slane %v3508_v59, 2 }
  0x4b   : > { %5413 = vst [vmem:[#allocation33_spill] sm:$0xff] %v3653_v11  ;;  %5424 = vst [vmem:[#allocation44_spill] sm:$0xff] %v3725_v28 }
  0x4d   : > { %442 = vrot.lane.b32.xlu1 %v3558_v33, %s3250_s22  ;;  %440 = vrot.lane.b32.xlu0 %v3573_v53, %s3250_s22  ;;  %v484_v33 = vrot.slane %v3327_v6, 2 }
  0x4f   : > { %v3602_v1 = vsel %vm480_vm1, %v484_v33, %v3595_v37  ;;  %v490_v33 = vrot.slane %v3346_v14, 2 }
  0x51   : > { %446 = vrot.lane.b32.xlu1 %v3576_v58, %s3250_s22  ;;  %444 = vrot.lane.b32.xlu0 %v3585_v12, %s3250_s22  ;;  %v3629_v58 = vrot.slane %v3364_v19, 2 }
  0x53   : > { %5409 = vst [vmem:[#allocation29_spill] sm:$0xff] %v3629_v58 }
  0x55   : > { %531 = vrot.lane.b32.xlu1 %v482_v42, %s3251_s23  ;;  %529 = vrot.lane.b32.xlu0 %v483_v46, %s3251_s23  ;;  %v3614_v42 = vsel %vm480_vm1, %v487_v63, %v3605_v5  ;;  %v3617_v46 = vrot.slane %v3343_v13, 2  ;;  %v493_v63 = vrot.slane %v3367_v20, 2 }
  0x56   : > { %5406 = vst [vmem:[#allocation26_spill] sm:$0xff] %v3614_v42 }
  0x57   : > { %5407 = vst [vmem:[#allocation27_spill] sm:$0xff] %v3617_v46  ;;  %v3626_v38 = vsel %vm480_vm1, %v490_v33, %v3617_v46  ;;  %v3638_v32 = vsel %vm480_vm1, %v493_v63, %v3629_v58  ;;  %v496_v33 = vrot.slane %v3385_v25, 2  ;;  %v499_v63 = vrot.slane %v3403_v30, 2 }
  0x58   : > { %5408 = vst [vmem:[#allocation28_spill] sm:$0xff] %v3626_v38  ;;  %5410 = vst [vmem:[#allocation30_spill] sm:$0xff] %v3638_v32 }
  0x59   : > { %535 = vrot.lane.b32.xlu1 %v3595_v37, %s3251_s23  ;;  %533 = vrot.lane.b32.xlu0 %v3602_v1, %s3251_s23  ;;  %v3650_v12 = vsel %vm480_vm1, %v496_v33, %v3641_v41  ;;  %v3662_v53 = vsel %vm480_vm1, %v499_v63, %v3653_v11  ;;  %v502_v33 = vrot.slane %v3421_v35, 2  ;;  %v505_v63 = vrot.slane %v3439_v40, 2 }
  0x5a   : > { %5412 = vst [vmem:[#allocation32_spill] sm:$0xff] %v3650_v12  ;;  %5414 = vst [vmem:[#allocation34_spill] sm:$0xff] %v3662_v53 }
  0x5d   : > { %539 = vrot.lane.b32.xlu1 %v3605_v5, %s3251_s23  ;;  %537 = vrot.lane.b32.xlu0 %v3614_v42, %s3251_s23 }
  0x61   : > { %543 = vrot.lane.b32.xlu1 %v3617_v46, %s3251_s23  ;;  %541 = vrot.lane.b32.xlu0 %v3626_v38, %s3251_s23  ;;  %v3737_v46 = vrot.slane %v3526_v4, 2 }
  0x63   : > { %5426 = vst [vmem:[#allocation46_spill] sm:$0xff] %v3737_v46 }
  0x65   : > { %547 = vrot.lane.b32.xlu1 %v3629_v58, %s3251_s23  ;;  %545 = vrot.lane.b32.xlu0 %v3638_v32, %s3251_s23  ;;  %v3665_v58 = vrot.slane %v3418_v34, 2 }
  0x67   : > { %5415 = vst [vmem:[#allocation35_spill] sm:$0xff] %v3665_v58 }
  0x69   : > { %551 = vrot.lane.b32.xlu1 %v3641_v41, %s3251_s23  ;;  %549 = vrot.lane.b32.xlu0 %v3650_v12, %s3251_s23  ;;  %v3674_v41 = vsel %vm480_vm1, %v502_v33, %v3665_v58  ;;  %v3677_v12 = vrot.slane %v3436_v39, 2  ;;  %v508_v33 = vrot.slane %v3457_v45, 2 }
  0x6a   : > { %5416 = vst [vmem:[#allocation36_spill] sm:$0xff] %v3674_v41 }
  0x6b   : > { %5417 = vst [vmem:[#allocation37_spill] sm:$0xff] %v3677_v12 }
  0x6d   : > { %555 = vrot.lane.b32.xlu1 %v3653_v11, %s3251_s23  ;;  %553 = vrot.lane.b32.xlu0 %v3662_v53, %s3251_s23  ;;  %v3686_v11 = vsel %vm480_vm1, %v505_v63, %v3677_v12  ;;  %v3689_v53 = vrot.slane %v3454_v44, 2  ;;  %v511_v63 = vrot.slane %v3475_v50, 2 }
  0x6e   : > { %5418 = vst [vmem:[#allocation38_spill] sm:$0xff] %v3686_v11 }
  0x6f   : > { %5419 = vst [vmem:[#allocation39_spill] sm:$0xff] %v3689_v53 }
  0x71   : > { %559 = vrot.lane.b32.xlu1 %v3665_v58, %s3251_s23  ;;  %557 = vrot.lane.b32.xlu0 %v3674_v41, %s3251_s23  ;;  %v3698_v58 = vsel %vm480_vm1, %v508_v33, %v3689_v53  ;;  %v3701_v41 = vrot.slane %v3472_v49, 2  ;;  %v514_v33 = vrot.slane %v3493_v55, 2 }
  0x73   : > { %5420 = vst [vmem:[#allocation40_spill] sm:$0xff] %v3701_v41 }
  0x75   : > { %563 = vrot.lane.b32.xlu1 %v3677_v12, %s3251_s23  ;;  %561 = vrot.lane.b32.xlu0 %v3686_v11, %s3251_s23  ;;  %v3710_v12 = vsel %vm480_vm1, %v511_v63, %v3701_v41  ;;  %v3713_v11 = vrot.slane %v3490_v54, 2  ;;  %v517_v63 = vrot.slane %v3511_v60, 2 }
  0x76   : > { %5421 = vst [vmem:[#allocation41_spill] sm:$0xff] %v3710_v12 }
  0x77   : > { %5422 = vst [vmem:[#allocation42_spill] sm:$0xff] %v3713_v11  ;;  %v3722_v62 = vsel %vm480_vm1, %v514_v33, %v3713_v11  ;;  %v3734_v32 = vsel %vm480_vm1, %v517_v63, %v3725_v28  ;;  %v520_v33 = vrot.slane %v3529_v8, 2  ;;  %v523_v63 = vrot.slane %v3547_v23, 2 }
  0x78   : > { %5423 = vst [vmem:[#allocation43_spill] sm:$0xff] %v3722_v62  ;;  %5425 = vst [vmem:[#allocation45_spill] sm:$0xff] %v3734_v32 }
  0x79   : > { %567 = vrot.lane.b32.xlu1 %v3689_v53, %s3251_s23  ;;  %565 = vrot.lane.b32.xlu0 %v3698_v58, %s3251_s23 }
  0x7d   : > { %571 = vrot.lane.b32.xlu1 %v3701_v41, %s3251_s23  ;;  %569 = vrot.lane.b32.xlu0 %v3710_v12, %s3251_s23 }
  0x81   : > { %575 = vrot.lane.b32.xlu1 %v3713_v11, %s3251_s23  ;;  %573 = vrot.lane.b32.xlu0 %v3722_v62, %s3251_s23  ;;  %v3746_v11 = vsel %vm480_vm1, %v520_v33, %v3737_v46  ;;  %v3765_v33 = vrot.slane %v3562_v43, 2 }
  0x82   : > { %5427 = vst [vmem:[#allocation47_spill] sm:$0xff] %v3746_v11 }
  0x83   : > { %5431 = vst [vmem:[#allocation51_spill] sm:$0xff] %v3765_v33 }
  0x85   : > { %579 = vrot.lane.b32.xlu1 %v3725_v28, %s3251_s23  ;;  %577 = vrot.lane.b32.xlu0 %v3734_v32, %s3251_s23  ;;  %v3762_v28 = vsel %vm480_vm1, %v523_v63, %v3749_v10  ;;  %v526_v32 = vrot.slane %v3565_v48, 2 }
  0x86   : > { %5430 = vst [vmem:[#allocation50_spill] sm:$0xff] %v3762_v28 }
  0x87   : > { %v3752_v57 = vpop.permute.xlu1 %390  ;;  %v3754_v62 = vpop.permute.xlu0 %386 }
  0x88   : > { %5429 = vst [vmem:[#allocation49_spill] sm:$0xff] %v3754_v62 }
  0x89   : > { %583 = vrot.lane.b32.xlu1 %v3737_v46, %s3251_s23  ;;  %581 = vrot.lane.b32.xlu0 %v3746_v11, %s3251_s23  ;;  %v3778_v46 = vsel %vm480_vm1, %v526_v32, %v3765_v33 }
  0x8a   : > { %5433 = vst [vmem:[#allocation53_spill] sm:$0xff] %v3778_v46 }
  0x8b   : > { %v3768_v38 = vpop.permute.xlu1 %394  ;;  %v3770_v5 = vpop.permute.xlu0 %384 }
  0x8c   : > { %5432 = vst [vmem:[#allocation52_spill] sm:$0xff] %v3770_v5 }
  0x8d   : > { %587 = vrot.lane.b32.xlu1 %v3749_v10, %s3251_s23  ;;  %585 = vrot.lane.b32.xlu0 %v3762_v28, %s3251_s23 }
  0x8f   : > { %v3780_v63 = vpop.permute.xlu1 %388  ;;  %v3782_v62 = vpop.permute.xlu0 %392 }
  0x90   : > { %5434 = vst [vmem:[#allocation54_spill] sm:$0xff] %v3780_v63 }
  0x91   : > { %591 = vrot.lane.b32.xlu1 %v3765_v33, %s3251_s23  ;;  %589 = vrot.lane.b32.xlu0 %v3778_v46, %s3251_s23 }
  0x93   : > { %v3788_v5 = vpop.permute.xlu1 %398  ;;  %v3790_v10 = vpop.permute.xlu0 %396 }
  0x95   : > { %629 = vrot.lane.b32.xlu1 %v3311_v0, %s3252_s24  ;;  %627 = vrot.lane.b32.xlu0 %v3327_v6, %s3252_s24 }
  0x97   : > { %v3796_v32 = vpop.permute.xlu1 %402  ;;  %v3798_v63 = vpop.permute.xlu0 %400 }
  0x99   : > { %633 = vrot.lane.b32.xlu1 %v3317_v2, %s3252_s24  ;;  %631 = vrot.lane.b32.xlu0 %v3330_v7, %s3252_s24 }
  0x9b   : > { %v3804_v33 = vpop.permute.xlu1 %406  ;;  %v3806_v46 = vpop.permute.xlu0 %404 }
  0x9d   : > { %637 = vrot.lane.b32.xlu1 %v3343_v13, %s3252_s24  ;;  %635 = vrot.lane.b32.xlu0 %v3346_v14, %s3252_s24 }
  0x9f   : > { %v3812_v6 = vpop.permute.xlu1 %410  ;;  %v3814_v28 = vpop.permute.xlu0 %408 }
  0xa1   : > { %641 = vrot.lane.b32.xlu1 %v3364_v19, %s3252_s24  ;;  %639 = vrot.lane.b32.xlu0 %v3367_v20, %s3252_s24 }
  0xa3   : > { %v3820_v11 = vpop.permute.xlu1 %414  ;;  %v3822_v41 = vpop.permute.xlu0 %412 }
  0xa5   : > { %645 = vrot.lane.b32.xlu1 %v3382_v24, %s3252_s24  ;;  %643 = vrot.lane.b32.xlu0 %v3385_v25, %s3252_s24 }
  0xa7   : > { %v3828_v61 = vpop.permute.xlu1 %418  ;;  %v3830_v52 = vpop.permute.xlu0 %416 }
  0xa8   : > { %5435 = vst [vmem:[#allocation55_spill] sm:$0xff] %v3828_v61  ;;  %5436 = vst [vmem:[#allocation56_spill] sm:$0xff] %v3830_v52 }
  0xa9   : > { %649 = vrot.lane.b32.xlu1 %v3400_v29, %s3252_s24  ;;  %647 = vrot.lane.b32.xlu0 %v3403_v30, %s3252_s24 }
  0xab   : > { %v3836_v42 = vpop.permute.xlu1 %422  ;;  %v3838_v12 = vpop.permute.xlu0 %420 }
  0xac   : > { %5437 = vst [vmem:[#allocation57_spill] sm:$0xff] %v3838_v12 }
  0xad   : > { %653 = vrot.lane.b32.xlu1 %v3418_v34, %s3252_s24  ;;  %651 = vrot.lane.b32.xlu0 %v3421_v35, %s3252_s24 }
  0xaf   : > { %v3844_v37 = vpop.permute.xlu1 %426  ;;  %v3846_v61 = vpop.permute.xlu0 %424 }
  0xb1   : > { %657 = vrot.lane.b32.xlu1 %v3436_v39, %s3252_s24  ;;  %655 = vrot.lane.b32.xlu0 %v3439_v40, %s3252_s24 }
  0xb3   : > { %v3852_v52 = vpop.permute.xlu1 %430  ;;  %v3854_v53 = vpop.permute.xlu0 %428 }
  0xb5   : > { %661 = vrot.lane.b32.xlu1 %v3454_v44, %s3252_s24  ;;  %659 = vrot.lane.b32.xlu0 %v3457_v45, %s3252_s24 }
  0xb7   : > { %v3860_v12 = vpop.permute.xlu1 %434  ;;  %v3862_v56 = vpop.permute.xlu0 %432 }
  0xb8   : > { %5438 = vst [vmem:[#allocation58_spill] sm:$0xff] %v3860_v12  ;;  %5439 = vst [vmem:[#allocation59_spill] sm:$0xff] %v3862_v56 }
  0xb9   : > { %665 = vrot.lane.b32.xlu1 %v3472_v49, %s3252_s24  ;;  %663 = vrot.lane.b32.xlu0 %v3475_v50, %s3252_s24 }
  0xbb   : > { %v3868_v39 = vpop.permute.xlu1 %438  ;;  %v3870_v40 = vpop.permute.xlu0 %436 }
  0xbc   : > { %5440 = vst [vmem:[#allocation60_spill] sm:$0xff] %v3870_v40 }
  0xbd   : > { %669 = vrot.lane.b32.xlu1 %v3490_v54, %s3252_s24  ;;  %667 = vrot.lane.b32.xlu0 %v3493_v55, %s3252_s24 }
  0xbf   : > { %v3876_v45 = vpop.permute.xlu1 %442  ;;  %v3878_v12 = vpop.permute.xlu0 %440 }
  0xc0   : > { %5441 = vst [vmem:[#allocation61_spill] sm:$0xff] %v3876_v45  ;;  %5442 = vst [vmem:[#allocation62_spill] sm:$0xff] %v3878_v12 }
  0xc1   : > { %673 = vrot.lane.b32.xlu1 %v3508_v59, %s3252_s24  ;;  %671 = vrot.lane.b32.xlu0 %v3511_v60, %s3252_s24 }
  0xc3   : > { %v3884_v56 = vpop.permute.xlu1 %446  ;;  %v3886_v40 = vpop.permute.xlu0 %444 }
  0xc4   : > { %5443 = vst [vmem:[#allocation63_spill] sm:$0xff] %v3884_v56  ;;  %5444 = vst [vmem:[#allocation64_spill] sm:$0xff] %v3886_v40  ;;  %v1221_v40 = vsel %vm1217_vm2, %v3311_v0, %v3752_v57  ;;  %v1222_v0 = vsel %vm1217_vm2, %v3330_v7, %v3782_v62  ;;  %v1224_v62 = vsel %vm1217_vm2, %v3346_v14, %v3790_v10 }
  0xc5   : > { %677 = vrot.lane.b32.xlu1 %v3526_v4, %s3252_s24  ;;  %675 = vrot.lane.b32.xlu0 %v3529_v8, %s3252_s24  ;;  %v1226_v10 = vsel %vm1217_vm2, %v3367_v20, %v3798_v63 }
  0xc7   : > { %v3892_v45 = vpop.permute.xlu1 %531  ;;  %v3894_v12 = vpop.permute.xlu0 %529 }
  0xc8   : > { %5445 = vst [vmem:[#allocation65_spill] sm:$0xff] %v3892_v45  ;;  %5446 = vst [vmem:[#allocation66_spill] sm:$0xff] %v3894_v12  ;;  %v300_v45 = vld [vmem:[%s3308_s21 + $0x108] sm:$0xff]  ;;  %v299_v12 = vld [vmem:[%s3308_s21 + $0x100] sm:$0xff] }
  0xc9   : > { %681 = vrot.lane.b32.xlu1 %v3544_v18, %s3252_s24  ;;  %679 = vrot.lane.b32.xlu0 %v3547_v23, %s3252_s24  ;;  %v1223_v23 = vsel %vm1217_vm2, %v3317_v2, %v3768_v38  ;;  %v1225_v38 = vsel %vm1217_vm2, %v3343_v13, %v3788_v5 }
  0xcb   : > { %v536_v56 = vpop.permute.xlu1 %535  ;;  %v3903_v4 = vpop.permute.xlu0 %533 }
  0xcc   : > { %5447 = vst [vmem:[#allocation67_spill] sm:$0xff] %v3903_v4  ;;  %v3906_v8 = vsel %vm1250_vm3, %v1221_v40, %v536_v56 }
  0xcd   : > { %5448 = vst [vmem:[#allocation68_spill] sm:$0xff] %v3906_v8  ;;  %685 = vrot.lane.b32.xlu1 %v3562_v43, %s3252_s24  ;;  %683 = vrot.lane.b32.xlu0 %v3565_v48, %s3252_s24 }
  0xcf   : > { %v540_v57 = vpop.permute.xlu1 %539  ;;  %v538_v4 = vpop.permute.xlu0 %537 }
  0xd0   : > { %v3921_v56 = vsel %vm1250_vm3, %v1223_v23, %v540_v57  ;;  %v3924_v40 = vsel %vm1250_vm3, %v1222_v0, %v538_v4 }
  0xd1   : > { %689 = vrot.lane.b32.xlu1 %v300_v45, %s3252_s24  ;;  %687 = vrot.lane.b32.xlu0 %v299_v12, %s3252_s24  ;;  %v1227_v12 = vsel %vm1217_vm2, %v3364_v19, %v3796_v32 }
  0xd3   : > { %v544_v8 = vpop.permute.xlu1 %543  ;;  %v542_v2 = vpop.permute.xlu0 %541 }
  0xd4   : > { %v3935_v23 = vsel %vm1250_vm3, %v1225_v38, %v544_v8  ;;  %v3938_v4 = vsel %vm1250_vm3, %v1224_v62, %v542_v2 }
  0xd5   : > { %728 = vrot.lane.b32.xlu1 %v3320_v3, %s3253_s25  ;;  %726 = vrot.lane.b32.xlu0 %v3353_v15, %s3253_s25  ;;  %v1229_v3 = vsel %vm1217_vm2, %v3382_v24, %v3804_v33  ;;  %v1228_v15 = vsel %vm1217_vm2, %v3385_v25, %v3806_v46  ;;  %v1231_v24 = vsel %vm1217_vm2, %v3400_v29, %v3812_v6 }
  0xd6   : > { %v1230_v25 = vsel %vm1217_vm2, %v3403_v30, %v3814_v28  ;;  %v1233_v29 = vsel %vm1217_vm2, %v3418_v34, %v3820_v11  ;;  %v1232_v30 = vsel %vm1217_vm2, %v3421_v35, %v3822_v41  ;;  %v1237_v35 = vsel %vm1217_vm2, %v3454_v44, %v3836_v42 }
  0xd7   : > { %v548_v8 = vpop.permute.xlu1 %547  ;;  %v546_v5 = vpop.permute.xlu0 %545  ;;  %v1238_v44 = vsel %vm1217_vm2, %v3475_v50, %v3846_v61  ;;  %v1240_v61 = vsel %vm1217_vm2, %v3493_v55, %v3854_v53 }
  0xd8   : > { %v3951_v2 = vsel %vm1250_vm3, %v1227_v12, %v548_v8  ;;  %v3954_v45 = vsel %vm1250_vm3, %v1226_v10, %v546_v5  ;;  %v1239_v5 = vsel %vm1217_vm2, %v3472_v49, %v3844_v37  ;;  %v1241_v37 = vsel %vm1217_vm2, %v3490_v54, %v3852_v52  ;;  %v5450_v52 = vld [vmem:[#allocation59_spill] sm:$0xff] }
  0xd9   : > { %732 = vrot.lane.b32.xlu1 %v3337_v9, %s3253_s25  ;;  %730 = vrot.lane.b32.xlu0 %v3357_v16, %s3253_s25  ;;  %v1242_v53 = vsel %vm1217_vm2, %v3511_v60, %v5450_v52 }
  0xdb   : > { %v552_v19 = vpop.permute.xlu1 %551  ;;  %v550_v63 = vpop.permute.xlu0 %549 }
  0xdc   : > { %v3967_v32 = vsel %vm1250_vm3, %v1229_v3, %v552_v19  ;;  %v3970_v0 = vsel %vm1250_vm3, %v1228_v15, %v550_v63 }
  0xdd   : > { %736 = vrot.lane.b32.xlu1 %v3360_v17, %s3253_s25  ;;  %734 = vrot.lane.b32.xlu0 %v3375_v21, %s3253_s25 }
  0xdf   : > { %v556_v46 = vpop.permute.xlu1 %555  ;;  %v554_v33 = vpop.permute.xlu0 %553 }
  0xe0   : > { %v3983_v57 = vsel %vm1250_vm3, %v1231_v24, %v556_v46  ;;  %v3986_v38 = vsel %vm1250_vm3, %v1230_v25, %v554_v33 }
  0xe1   : > { %740 = vrot.lane.b32.xlu1 %v3378_v22, %s3253_s25  ;;  %738 = vrot.lane.b32.xlu0 %v3393_v26, %s3253_s25 }
  0xe3   : > { %v560_v28 = vpop.permute.xlu1 %559  ;;  %v558_v6 = vpop.permute.xlu0 %557 }
  0xe4   : > { %v3999_v62 = vsel %vm1250_vm3, %v1233_v29, %v560_v28  ;;  %v4002_v12 = vsel %vm1250_vm3, %v1232_v30, %v558_v6  ;;  %v5452_v28 = vld [vmem:[#allocation14_spill] sm:$0xff] }
  0xe5   : > { %744 = vrot.lane.b32.xlu1 %v3396_v27, %s3253_s25  ;;  %742 = vrot.lane.b32.xlu0 %v3411_v31, %s3253_s25  ;;  %v1245_v6 = vsel %vm1217_vm2, %v5452_v28, %v3868_v39  ;;  %v5460_v28 = vld [vmem:[#allocation41_spill] sm:$0xff] }
  0xe7   : > { %v4008_v10 = vpop.permute.xlu1 %563  ;;  %v4010_v34 = vpop.permute.xlu0 %561 }
  0xe9   : > { %758 = vrot.lane.b32.xlu1 %v3483_v51, %s3253_s25  ;;  %746 = vrot.lane.b32.xlu0 %v3429_v36, %s3253_s25 }
  0xeb   : > { %v568_v41 = vpop.permute.xlu1 %567  ;;  %v4019_v11 = vpop.permute.xlu0 %565 }
  0xec   : > { %v4022_v8 = vsel %vm1250_vm3, %v1237_v35, %v568_v41  ;;  %v5453_v35 = vld [vmem:[#allocation60_spill] sm:$0xff]  ;;  %v5454_v41 = vld [vmem:[#allocation15_spill] sm:$0xff] }
  0xed   : > { %857 = vrot.lane.b32.xlu1 %v3698_v58, %s3254_s26  ;;  %825 = vrot.lane.b32.xlu0 %v3602_v1, %s3254_s26 }
  0xef   : > { %v572_v42 = vpop.permute.xlu1 %571  ;;  %v570_v3 = vpop.permute.xlu0 %569 }
  0xf0   : > { %v4035_v15 = vsel %vm1250_vm3, %v1239_v5, %v572_v42  ;;  %v4038_v19 = vsel %vm1250_vm3, %v1238_v44, %v570_v3  ;;  %v1244_v5 = vsel %vm1217_vm2, %v5454_v41, %v5453_v35 }
  0xf1   : > { %955 = vrot.lane.b32.xlu1 %v3475_v50, %s3255_s27  ;;  %923 = vrot.lane.b32.xlu0 %v3330_v7, %s3255_s27  ;;  %v5449_v7 = vld [vmem:[#allocation58_spill] sm:$0xff] }
  0xf2   : > { %v1243_v50 = vsel %vm1217_vm2, %v3508_v59, %v5449_v7  ;;  %v5458_v7 = vld [vmem:[#allocation62_spill] sm:$0xff] }
  0xf3   : > { %v576_v1 = vpop.permute.xlu1 %575  ;;  %v574_v63 = vpop.permute.xlu0 %573 }
  0xf4   : > { %v4051_v24 = vsel %vm1250_vm3, %v1241_v37, %v576_v1  ;;  %v4054_v25 = vsel %vm1250_vm3, %v1240_v61, %v574_v63  ;;  %v5455_v61 = vld [vmem:[#allocation39_spill] sm:$0xff]  ;;  %v5456_v1 = vld [vmem:[#allocation24_spill] sm:$0xff]  ;;  %v5457_v63 = vld [vmem:[#allocation61_spill] sm:$0xff] }
  0xf5   : > { %1022 = vrot.lane.b32.xlu1 %v3357_v16, %s3256_s28  ;;  %760 = vrot.lane.b32.xlu0 %v3468_v47, %s3253_s25  ;;  %v5451_v16 = vld [vmem:[#allocation10_spill] sm:$0xff]  ;;  %v1247_v39 = vsel %vm1217_vm2, %v3544_v18, %v5457_v63  ;;  %v5462_v18 = vld [vmem:[#allocation63_spill] sm:$0xff] }
  0xf6   : > { %v1249_v35 = vsel %vm1217_vm2, %v3562_v43, %v5462_v18  ;;  %v2649_v43 = vld [vmem:[%s5285_s1 + $0x78] sm:$0xff] }
  0xf7   : > { %v580_v46 = vpop.permute.xlu1 %579  ;;  %v578_v33 = vpop.permute.xlu0 %577  ;;  %3064 = vmatprep.subr.mxu0 %v2649_v43  ;;  %3138 = vmatprep.subr.mxu1 %v2649_v43 }
  0xf8   : > { %v4067_v29 = vsel %vm1250_vm3, %v1243_v50, %v580_v46  ;;  %v4070_v30 = vsel %vm1250_vm3, %v1242_v53, %v578_v33  ;;  %v5459_v50 = vld [vmem:[#allocation18_spill] sm:$0xff]  ;;  %3065 = vmatpush3.msra.mxu0 %v2649_v43  ;;  %3154 = vmatpush3.msra.mxu1 %v2649_v43 }
  0xf9   : > { %762 = vrot.lane.b32.xlu1 %v5451_v16, %s3253_s25  ;;  %1054 = vrot.lane.b32.xlu0 %v5451_v16, %s3256_s28  ;;  %v1246_v52 = vsel %vm1217_vm2, %v5459_v50, %v5458_v7  ;;  %v2648_v50 = vld [vmem:[%s5285_s1 + $0x70] sm:$0xff] }
  0xfa   : > { %3066 = vmatprep.subr.mxu0 %v2648_v50  ;;  %3139 = vmatprep.subr.mxu1 %v2648_v50 }
  0xfb   : > { %v584_v44 = vpop.permute.xlu1 %583  ;;  %v582_v42 = vpop.permute.xlu0 %581  ;;  %3067 = vmatpush3.msra.mxu0 %v2648_v50  ;;  %3155 = vmatpush3.msra.mxu1 %v2648_v50 }
  0xfc   : > { %v4083_v3 = vsel %vm1250_vm3, %v1245_v6, %v584_v44  ;;  %v4086_v37 = vsel %vm1250_vm3, %v1244_v5, %v582_v42  ;;  %v5461_v6 = vld [vmem:[#allocation26_spill] sm:$0xff]  ;;  %v5463_v5 = vld [vmem:[#allocation64_spill] sm:$0xff] }
  0xfd   : > { %859 = vrot.lane.b32.xlu1 %v5455_v61, %s3254_s26  ;;  %827 = vrot.lane.b32.xlu0 %v5456_v1, %s3254_s26  ;;  %v1248_v44 = vsel %vm1217_vm2, %v3565_v48, %v5463_v5 }
  0xff   : > { %v588_v53 = vpop.permute.xlu1 %587  ;;  %v586_v46 = vpop.permute.xlu0 %585 }
 0x100   : > { %v4099_v33 = vsel %vm1250_vm3, %v1247_v39, %v588_v53  ;;  %v4102_v16 = vsel %vm1250_vm3, %v1246_v52, %v586_v46  ;;  %v5464_v52 = vld [vmem:[#allocation3_spill] sm:$0xff]  ;;  %v2647_v53 = vld [vmem:[%s5285_s1 + $0x68] sm:$0xff] }
 0x101   : > { %1153 = vrot.lane.b32.xlu1 %v5460_v28, %s3257_s29  ;;  %1121 = vrot.lane.b32.xlu0 %v5461_v6, %s3257_s29 }
 0x102   : > { %3068 = vmatprep.subr.mxu0 %v2647_v53  ;;  %3140 = vmatprep.subr.mxu1 %v2647_v53 }
 0x103   : > { %v592_v42 = vpop.permute.xlu1 %591  ;;  %v590_v1 = vpop.permute.xlu0 %589  ;;  %3069 = vmatpush3.msra.mxu0 %v2647_v53  ;;  %3156 = vmatpush3.msra.mxu1 %v2647_v53 }
 0x104   : > { %v4115_v63 = vsel %vm1250_vm3, %v1249_v35, %v592_v42  ;;  %v4118_v39 = vsel %vm1250_vm3, %v1248_v44, %v590_v1  ;;  %v2645_v44 = vld [vmem:[%s5285_s1 + $0x58] sm:$0xff]  ;;  %v2644_v1 = vld [vmem:[%s5285_s1 + $0x50] sm:$0xff] }
 0x105   : > { %861 = vrot.lane.b32.xlu1 %v5460_v28, %s3254_s26  ;;  %829 = vrot.lane.b32.xlu0 %v5461_v6, %s3254_s26  ;;  %v5465_v6 = vld [vmem:[#allocation68_spill] sm:$0xff] }
 0x107   : > { %v4127_v48 = vpop.permute.xlu1 %629  ;;  %v4129_v7 = vpop.permute.xlu0 %627 }
 0x109   : > { %957 = vrot.lane.b32.xlu1 %v3472_v49, %s3255_s27  ;;  %925 = vrot.lane.b32.xlu0 %v5464_v52, %s3255_s27  ;;  %v2646_v49 = vld [vmem:[%s5285_s1 + $0x60] sm:$0xff]  ;;  %v5467_v52 = vld [vmem:[#allocation12_spill] sm:$0xff] }
 0x10a   : > { %3070 = vmatprep.subr.mxu0 %v2646_v49  ;;  %3141 = vmatprep.subr.mxu1 %v2646_v49 }
 0x10b   : > { %v634_v46 = vpop.permute.xlu1 %633  ;;  %v4141_v28 = vpop.permute.xlu0 %631  ;;  %3071 = vmatpush3.msra.mxu0 %v2646_v49  ;;  %3157 = vmatpush3.msra.mxu1 %v2646_v49  ;;  %v2641_v49 = vld [vmem:[%s5285_s1 + $0x38] sm:$0xff] }
 0x10c   : > { %v4145_v18 = vsel %vm1283_vm4, %v5465_v6, %v634_v46  ;;  %3072 = vmatprep.subr.mxu0 %v2645_v44  ;;  %3142 = vmatprep.subr.mxu1 %v2645_v44 }
 0x10d   : > { %959 = vrot.lane.b32.xlu1 %v3493_v55, %s3255_s27  ;;  %927 = vrot.lane.b32.xlu0 %v3346_v14, %s3255_s27  ;;  %v5466_v14 = vld [vmem:[#allocation9_spill] sm:$0xff] }
 0x10e   : > { %3073 = vmatpush3.msra.mxu0 %v2645_v44  ;;  %3158 = vmatpush3.msra.mxu1 %v2645_v44  ;;  %v5470_v44 = vld [vmem:[#allocation40_spill] sm:$0xff] }
 0x10f   : > { %v638_v35 = vpop.permute.xlu1 %637  ;;  %v636_v5 = vpop.permute.xlu0 %635  ;;  %3074 = vmatprep.subr.mxu0 %v2644_v1  ;;  %3143 = vmatprep.subr.mxu1 %v2644_v1 }
 0x110   : > { %v4159_v42 = vsel %vm1283_vm4, %v3921_v56, %v638_v35  ;;  %v4163_v55 = vsel %vm1283_vm4, %v3924_v40, %v636_v5  ;;  %3075 = vmatpush3.msra.mxu0 %v2644_v1  ;;  %3159 = vmatpush3.msra.mxu1 %v2644_v1 }
 0x111   : > { %1056 = vrot.lane.b32.xlu1 %v5466_v14, %s3256_s28  ;;  %1024 = vrot.lane.b32.xlu0 %v3337_v9, %s3256_s28  ;;  %v2643_v9 = vld [vmem:[%s5285_s1 + $0x48] sm:$0xff] }
 0x112   : > { %3076 = vmatprep.subr.mxu0 %v2643_v9  ;;  %3144 = vmatprep.subr.mxu1 %v2643_v9 }
 0x113   : > { %v642_v56 = vpop.permute.xlu1 %641  ;;  %v640_v43 = vpop.permute.xlu0 %639  ;;  %3077 = vmatpush3.msra.mxu0 %v2643_v9  ;;  %3160 = vmatpush3.msra.mxu1 %v2643_v9  ;;  %v5474_v9 = vld [vmem:[#allocation28_spill] sm:$0xff] }
 0x114   : > { %v4174_v40 = vsel %vm1283_vm4, %v3935_v23, %v642_v56  ;;  %v4178_v50 = vsel %vm1283_vm4, %v3938_v4, %v640_v43  ;;  %v2642_v4 = vld [vmem:[%s5285_s1 + $0x40] sm:$0xff] }
 0x115   : > { %766 = vrot.lane.b32.xlu1 %v5467_v52, %s3253_s25  ;;  %764 = vrot.lane.b32.xlu0 %v5466_v14, %s3253_s25  ;;  %v5471_v14 = vld [vmem:[#allocation25_spill] sm:$0xff] }
 0x116   : > { %3078 = vmatprep.subr.mxu0 %v2642_v4  ;;  %3145 = vmatprep.subr.mxu1 %v2642_v4 }
 0x117   : > { %v646_v23 = vpop.permute.xlu1 %645  ;;  %v644_v53 = vpop.permute.xlu0 %643  ;;  %3079 = vmatpush3.msra.mxu0 %v2642_v4  ;;  %3161 = vmatpush3.msra.mxu1 %v2642_v4  ;;  %v2637_v4 = vld [vmem:[%s5285_s1 + $0x18] sm:$0xff] }
 0x118   : > { %v4192_v46 = vsel %vm1283_vm4, %v3951_v2, %v646_v23  ;;  %v4196_v6 = vsel %vm1283_vm4, %v3954_v45, %v644_v53  ;;  %3080 = vmatprep.subr.mxu0 %v2641_v49  ;;  %3146 = vmatprep.subr.mxu1 %v2641_v49 }
 0x119   : > { %5468 = vst [vmem:[#allocation58_spill] sm:$0xff] %v4192_v46  ;;  %1058 = vrot.lane.b32.xlu1 %v5467_v52, %s3256_s28  ;;  %1026 = vrot.lane.b32.xlu0 %v3375_v21, %s3256_s28  ;;  %v2640_v21 = vld [vmem:[%s5285_s1 + $0x30] sm:$0xff]  ;;  %v2638_v52 = vld [vmem:[%s5285_s1 + $0x20] sm:$0xff]  ;;  %v5499_v46 = vld [vmem:[#allocation66_spill] sm:$0xff] }
 0x11a   : > { %3081 = vmatpush3.msra.mxu0 %v2641_v49  ;;  %3162 = vmatpush3.msra.mxu1 %v2641_v49  ;;  %v5477_v49 = vld [vmem:[#allocation43_spill] sm:$0xff] }
 0x11b   : > { %v650_v2 = vpop.permute.xlu1 %649  ;;  %v648_v35 = vpop.permute.xlu0 %647  ;;  %3082 = vmatprep.subr.mxu0 %v2640_v21  ;;  %3147 = vmatprep.subr.mxu1 %v2640_v21 }
 0x11c   : > { %v4207_v45 = vsel %vm1283_vm4, %v3967_v32, %v650_v2  ;;  %v4211_v5 = vsel %vm1283_vm4, %v3970_v0, %v648_v35  ;;  %v2639_v0 = vld [vmem:[%s5285_s1 + $0x28] sm:$0xff]  ;;  %3083 = vmatpush3.msra.mxu0 %v2640_v21  ;;  %3163 = vmatpush3.msra.mxu1 %v2640_v21 }
 0x11d   : > { %5469 = vst [vmem:[#allocation59_spill] sm:$0xff] %v4207_v45  ;;  %1155 = vrot.lane.b32.xlu1 %v5470_v44, %s3257_s29  ;;  %1123 = vrot.lane.b32.xlu0 %v5471_v14, %s3257_s29  ;;  %v2635_v35 = vld [vmem:[%s5285_s1 + $0x8] sm:$0xff] }
 0x11e   : > { %3084 = vmatprep.subr.mxu0 %v2639_v0  ;;  %3148 = vmatprep.subr.mxu1 %v2639_v0  ;;  %v5498_v45 = vld [vmem:[#allocation56_spill] sm:$0xff] }
 0x11f   : > { %v654_v32 = vpop.permute.xlu1 %653  ;;  %v652_v1 = vpop.permute.xlu0 %651  ;;  %3085 = vmatpush3.msra.mxu0 %v2639_v0  ;;  %3164 = vmatpush3.msra.mxu1 %v2639_v0 }
 0x120   : > { %v4225_v56 = vsel %vm1283_vm4, %v3983_v57, %v654_v32  ;;  %v4229_v43 = vsel %vm1283_vm4, %v3986_v38, %v652_v1  ;;  %3086 = vmatprep.subr.mxu0 %v2638_v52  ;;  %3149 = vmatprep.subr.mxu1 %v2638_v52  ;;  %v2634_v32 = vld [vmem:[%s5285_s1] sm:$0xff] }
 0x121   : > { %5472 = vst [vmem:[#allocation10_spill] sm:$0xff] %v4225_v56  ;;  %5473 = vst [vmem:[#allocation14_spill] sm:$0xff] %v4229_v43  ;;  %833 = vrot.lane.b32.xlu1 %v5474_v9, %s3254_s26  ;;  %831 = vrot.lane.b32.xlu0 %v5471_v14, %s3254_s26 }
 0x122   : > { %3087 = vmatpush3.msra.mxu0 %v2638_v52  ;;  %3165 = vmatpush3.msra.mxu1 %v2638_v52 }
 0x123   : > { %v658_v57 = vpop.permute.xlu1 %657  ;;  %v656_v23 = vpop.permute.xlu0 %655  ;;  %3088 = vmatprep.subr.mxu0 %v2637_v4  ;;  %3150 = vmatprep.subr.mxu1 %v2637_v4 }
 0x124   : > { %v4240_v38 = vsel %vm1283_vm4, %v3999_v62, %v658_v57  ;;  %v4244_v53 = vsel %vm1283_vm4, %v4002_v12, %v656_v23  ;;  %v2636_v12 = vld [vmem:[%s5285_s1 + $0x10] sm:$0xff]  ;;  %3089 = vmatpush3.msra.mxu0 %v2637_v4  ;;  %3166 = vmatpush3.msra.mxu1 %v2637_v4  ;;  %v5481_v4 = vld [vmem:[#allocation16_spill] sm:$0xff] }
 0x125   : > { %5475 = vst [vmem:[#allocation60_spill] sm:$0xff] %v4240_v38  ;;  %5476 = vst [vmem:[#allocation15_spill] sm:$0xff] %v4244_v53  ;;  %865 = vrot.lane.b32.xlu1 %v5477_v49, %s3254_s26  ;;  %863 = vrot.lane.b32.xlu0 %v5470_v44, %s3254_s26  ;;  %v5496_v38 = vld [vmem:[#allocation29_spill] sm:$0xff] }
 0x126   : > { %3090 = vmatprep.subr.mxu0 %v2636_v12  ;;  %3151 = vmatprep.subr.mxu1 %v2636_v12 }
 0x127   : > { %v4253_v62 = vpop.permute.xlu1 %661  ;;  %v4255_v2 = vpop.permute.xlu0 %659  ;;  %3091 = vmatpush3.msra.mxu0 %v2636_v12  ;;  %3167 = vmatpush3.msra.mxu1 %v2636_v12  ;;  %v5484_v12 = vld [vmem:[#allocation42_spill] sm:$0xff] }
 0x128   : > { %3092 = vmatprep.subr.mxu0 %v2635_v35  ;;  %3152 = vmatprep.subr.mxu1 %v2635_v35 }
 0x129   : > { %1157 = vrot.lane.b32.xlu1 %v5477_v49, %s3257_s29  ;;  %1125 = vrot.lane.b32.xlu0 %v5474_v9, %s3257_s29 }
 0x12a   : > { %3093 = vmatpush3.msra.mxu0 %v2635_v35  ;;  %3168 = vmatpush3.msra.mxu1 %v2635_v35 }
 0x12b   : > { %v666_v21 = vpop.permute.xlu1 %665  ;;  %v4267_v44 = vpop.permute.xlu0 %663  ;;  %3094 = vmatprep.subr.mxu0 %v2634_v32  ;;  %3153 = vmatprep.subr.mxu1 %v2634_v32 }
 0x12c   : > { %v4271_v14 = vsel %vm1283_vm4, %v4022_v8, %v666_v21  ;;  %3095 = vmatpush3.msra.mxu0 %v2634_v32  ;;  %3169 = vmatpush3.msra.mxu1 %v2634_v32 }
 0x12d   : > { %931 = vrot.lane.b32.xlu1 %v3367_v20, %s3255_s27  ;;  %929 = vrot.lane.b32.xlu0 %v3343_v13, %s3255_s27 }
 0x12f   : > { %v670_v1 = vpop.permute.xlu1 %669  ;;  %v668_v0 = vpop.permute.xlu0 %667 }
 0x130   : > { %v4282_v8 = vsel %vm1283_vm4, %v4035_v15, %v670_v1  ;;  %v4286_v9 = vsel %vm1283_vm4, %v4038_v19, %v668_v0  ;;  %v5478_v19 = vld [vmem:[#allocation11_spill] sm:$0xff] }
 0x131   : > { %963 = vrot.lane.b32.xlu1 %v3511_v60, %s3255_s27  ;;  %961 = vrot.lane.b32.xlu0 %v3490_v54, %s3255_s27 }
 0x133   : > { %v674_v13 = vpop.permute.xlu1 %673  ;;  %v672_v20 = vpop.permute.xlu0 %671 }
 0x134   : > { %v4294_v52 = vsel %vm1283_vm4, %v4051_v24, %v674_v13  ;;  %v4298_v15 = vsel %vm1283_vm4, %v4054_v25, %v672_v20  ;;  %v5489_v13 = vld [vmem:[#allocation45_spill] sm:$0xff] }
 0x135   : > { %1028 = vrot.lane.b32.xlu1 %v3360_v17, %s3256_s28  ;;  %768 = vrot.lane.b32.xlu0 %v5478_v19, %s3253_s25 }
 0x137   : > { %v678_v60 = vpop.permute.xlu1 %677  ;;  %v676_v57 = vpop.permute.xlu0 %675 }
 0x138   : > { %v4306_v54 = vsel %vm1283_vm4, %v4067_v29, %v678_v60  ;;  %v4310_v24 = vsel %vm1283_vm4, %v4070_v30, %v676_v57  ;;  %v3205_v60 = vld [vmem:[%s3308_s21 + $0x48] sm:$0xff] }
 0x139   : > { %5479 = vst [vmem:[#allocation39_spill] sm:$0xff] %v4306_v54  ;;  %1060 = vrot.lane.b32.xlu1 %v5478_v19, %s3256_s28  ;;  %1030 = vrot.lane.b32.xlu0 %v3393_v26, %s3256_s28 }
 0x13b   : > { %v682_v17 = vpop.permute.xlu1 %681  ;;  %v680_v25 = vpop.permute.xlu0 %679 }
 0x13c   : > { %v4318_v23 = vsel %vm1283_vm4, %v4083_v3, %v682_v17  ;;  %v4322_v29 = vsel %vm1283_vm4, %v4086_v37, %v680_v25  ;;  %v5485_v37 = vld [vmem:[#allocation27_spill] sm:$0xff]  ;;  %v3206_v25 = vld [vmem:[%s3308_s21 + $0x50] sm:$0xff] }
 0x13d   : > { %5480 = vst [vmem:[#allocation24_spill] sm:$0xff] %v4318_v23  ;;  %770 = vrot.lane.b32.xlu1 %v5481_v4, %s3253_s25  ;;  %1062 = vrot.lane.b32.xlu0 %v5481_v4, %s3256_s28  ;;  %v5490_v4 = vld [vmem:[#allocation19_spill] sm:$0xff] }
 0x13e   : > { %v3207_v23 = vld [vmem:[%s3308_s21] sm:$0xff] }
 0x13f   : > { %v686_v30 = vpop.permute.xlu1 %685  ;;  %v684_v49 = vpop.permute.xlu0 %683 }
 0x140   : > { %v4330_v26 = vsel %vm1283_vm4, %v4099_v33, %v686_v30  ;;  %v4334_v3 = vsel %vm1283_vm4, %v4102_v16, %v684_v49  ;;  %v5488_v16 = vld [vmem:[#allocation30_spill] sm:$0xff] }
 0x141   : > { %5482 = vst [vmem:[#allocation61_spill] sm:$0xff] %v4330_v26  ;;  %5483 = vst [vmem:[#allocation62_spill] sm:$0xff] %v4334_v3  ;;  %867 = vrot.lane.b32.xlu1 %v5484_v12, %s3254_s26  ;;  %835 = vrot.lane.b32.xlu0 %v5485_v37, %s3254_s26 }
 0x143   : > { %v690_v35 = vpop.permute.xlu1 %689  ;;  %v688_v21 = vpop.permute.xlu0 %687 }
 0x144   : > { %v4342_v32 = vsel %vm1283_vm4, %v4115_v63, %v690_v35  ;;  %v4346_v33 = vsel %vm1283_vm4, %v4118_v39, %v688_v21 }
 0x145   : > { %5486 = vst [vmem:[#allocation18_spill] sm:$0xff] %v4342_v32  ;;  %5487 = vst [vmem:[#allocation41_spill] sm:$0xff] %v4346_v33  ;;  %1129 = vrot.lane.b32.xlu1 %v5488_v16, %s3257_s29  ;;  %1127 = vrot.lane.b32.xlu0 %v5485_v37, %s3257_s29  ;;  %v5492_v37 = vld [vmem:[#allocation13_spill] sm:$0xff]  ;;  %v3258_v32 = vmov 1983009808   ;;  %v1550_v33 = vlaneseq }
 0x146   : > { %v1548_v53 = vunpack.c.l.s4 %v3258_v32 }
 0x147   : > { %v4352_v1 = vpop.permute.xlu1 %728  ;;  %v727_v0 = vpop.permute.xlu0 %726 }
 0x148   : > { %v1549_v32 = vunpack.c.0.s8 %v1548_v53  ;;  %v3209_v53 = vld [vmem:[%s3308_s21 + $0xe0] sm:$0xff] }
 0x149   : > { %1161 = vrot.lane.b32.xlu1 %v5489_v13, %s3257_s29  ;;  %1159 = vrot.lane.b32.xlu0 %v5484_v12, %s3257_s29 }
 0x14b   : > { %v4358_v63 = vpop.permute.xlu1 %732  ;;  %v4360_v39 = vpop.permute.xlu0 %730 }
 0x14d   : > { %869 = vrot.lane.b32.xlu1 %v5489_v13, %s3254_s26  ;;  %837 = vrot.lane.b32.xlu0 %v5488_v16, %s3254_s26  ;;  %v5493_v16 = vld [vmem:[#allocation47_spill] sm:$0xff] }
 0x14f   : > { %v4366_v20 = vpop.permute.xlu1 %736  ;;  %v4368_v19 = vpop.permute.xlu0 %734 }
 0x151   : > { %965 = vrot.lane.b32.xlu1 %v3508_v59, %s3255_s27  ;;  %933 = vrot.lane.b32.xlu0 %v3205_v60, %s3255_s27 }
 0x153   : > { %v4374_v57 = vpop.permute.xlu1 %740  ;;  %v4376_v17 = vpop.permute.xlu0 %738 }
 0x155   : > { %935 = vrot.lane.b32.xlu1 %v3206_v25, %s3255_s27  ;;  %774 = vrot.lane.b32.xlu0 %v5490_v4, %s3253_s25 }
 0x157   : > { %v4382_v30 = vpop.permute.xlu1 %744  ;;  %v4384_v49 = vpop.permute.xlu0 %742 }
 0x158   : > { %5491 = vst [vmem:[#allocation26_spill] sm:$0xff] %v4382_v30 }
 0x159   : > { %1032 = vrot.lane.b32.xlu1 %v3378_v22, %s3256_s28  ;;  %967 = vrot.lane.b32.xlu0 %v5454_v41, %s3255_s27  ;;  %v5494_v22 = vld [vmem:[#allocation32_spill] sm:$0xff] }
 0x15b   : > { %v759_v59 = vpop.permute.xlu1 %758  ;;  %v4390_v12 = vpop.permute.xlu0 %746 }
 0x15d   : > { %772 = vrot.lane.b32.xlu1 %v5492_v37, %s3253_s25  ;;  %1064 = vrot.lane.b32.xlu0 %v5492_v37, %s3256_s28  ;;  %v5495_v37 = vld [vmem:[#allocation44_spill] sm:$0xff] }
 0x15f   : > { %v858_v35 = vpop.permute.xlu1 %857  ;;  %v826_v21 = vpop.permute.xlu0 %825 }
 0x161   : > { %873 = vrot.lane.b32.xlu1 %v5493_v16, %s3254_s26  ;;  %841 = vrot.lane.b32.xlu0 %v5494_v22, %s3254_s26 }
 0x163   : > { %v956_v41 = vpop.permute.xlu1 %955  ;;  %v924_v13 = vpop.permute.xlu0 %923 }
 0x165   : > { %1066 = vrot.lane.b32.xlu1 %v5490_v4, %s3256_s28  ;;  %1034 = vrot.lane.b32.xlu0 %v3411_v31, %s3256_s28  ;;  %v5497_v4 = vld [vmem:[#allocation52_spill] sm:$0xff]  ;;  %v4416_v31 = vld [vmem:[%s3308_s21 + $0x80] sm:$0xff] }
 0x166   : > { %v1218_v3 = vsel %vm1217_vm2, %v3207_v23, %v5497_v4  ;;  %v1234_v43 = vsel %vm1217_vm2, %v4416_v31, %v5498_v45  ;;  %v1551_v4 = vshrl.u32 %v1550_v33, 7 }
 0x167   : > { %v1023_v60 = vpop.permute.xlu1 %1022  ;;  %v4404_v25 = vpop.permute.xlu0 %760  ;;  %v1251_v30 = vsel %vm1250_vm3, %v1218_v3, %v5499_v46  ;;  %v1267_v23 = vsel %vm1250_vm3, %v1234_v43, %v4010_v34 }
 0x168   : > { %v1284_v45 = vsel %vm1283_vm4, %v1251_v30, %v4129_v7  ;;  %v1300_v46 = vsel %vm1283_vm4, %v1267_v23, %v4255_v2  ;;  %v3210_v7 = vld [vmem:[%s3308_s21 + $0x60] sm:$0xff] }
 0x169   : > { %1163 = vrot.lane.b32.xlu1 %v5495_v37, %s3257_s29  ;;  %1131 = vrot.lane.b32.xlu0 %v5496_v38, %s3257_s29  ;;  %v1333_v54 = vsel %vm1316_vm5, %v1300_v46, %v759_v59 }
 0x16a   : > { %v1366_v34 = vsel %vm1349_vm6, %v1333_v54, %v858_v35 }
 0x16b   : > { %v4410_v56 = vpop.permute.xlu1 %762  ;;  %v1055_v26 = vpop.permute.xlu0 %1054  ;;  %v1399_v2 = vsel %vm1382_vm7, %v1366_v34, %v956_v41 }
 0x16c   : > { %v1432_v54 = vsel %vm1415_vm8, %v1399_v2, %v1055_v26 }
 0x16d   : > { %871 = vrot.lane.b32.xlu1 %v5495_v37, %s3254_s26  ;;  %839 = vrot.lane.b32.xlu0 %v5496_v38, %s3254_s26  ;;  %v1317_v38 = vsel %vm1316_vm5, %v1284_v45, %v727_v0  ;;  %v4447_v0 = vsub.s32 %v1549_v32, %v1551_v4 }
 0x16e   : > { %v1350_v43 = vsel %vm1349_vm6, %v1317_v38, %v826_v21 }
 0x16f   : > { %v4433_v3 = vpop.permute.xlu1 %859  ;;  %v4435_v37 = vpop.permute.xlu0 %827  ;;  %v1383_v33 = vsel %vm1382_vm7, %v1350_v43, %v924_v13 }
 0x170   : > { %v1416_v30 = vsel %vm1415_vm8, %v1383_v33, %v1023_v60 }
 0x171   : > { %971 = vrot.lane.b32.xlu1 %v3209_v53, %s3255_s27  ;;  %939 = vrot.lane.b32.xlu0 %v3210_v7, %s3255_s27 }
 0x173   : > { %v1154_v59 = vpop.permute.xlu1 %1153  ;;  %v1122_v35 = vpop.permute.xlu0 %1121 }
 0x174   : > { %v1465_v21 = vsel %vm1448_vm9, %v1432_v54, %v1154_v59  ;;  %v1449_v23 = vsel %vm1448_vm9, %v1416_v30, %v1122_v35 }
 0x175   : > { %v1498_v45 = vsel %vm1481_vm10, %v1465_v21, 0.0  ;;  %v1482_v41 = vsel %vm1481_vm10, %v1449_v23, 0.0  ;;  %1165 = vrot.lane.b32.xlu1 %v5493_v16, %s3257_s29  ;;  %1133 = vrot.lane.b32.xlu0 %v5494_v22, %s3257_s29  ;;  %v3211_v16 = vld [vmem:[%s3308_s21 + $0xd8] sm:$0xff]  ;;  %v5500_v21 = vld [vmem:[#allocation21_spill] sm:$0xff] }
 0x176   : > { %v1810_v13 = vcombine.high %v1498_v45, %v1498_v45  ;;  %v1817_v26 = vrot.slane %v1498_v45, %v4447_v0  ;;  %v1546_v60 = vcombine.high %v1482_v41, %v1482_v41  ;;  %v1553_v32 = vrot.slane %v1482_v41, %v4447_v0  ;;  %v3212_v22 = vld [vmem:[%s3308_s21 + $0x58] sm:$0xff] }
 0x177   : > { %v4461_v4 = vpop.permute.xlu1 %861  ;;  %v4463_v46 = vpop.permute.xlu0 %829 }
 0x178   : > { %v1824_v38 = vrot.slane %v1810_v13, %v4447_v0  ;;  %v1825_v34 = vcombine.high %v1817_v26, %v1817_v26  ;;  %v1560_v43 = vrot.slane %v1546_v60, %v4447_v0  ;;  %v1561_v53 = vcombine.high %v1553_v32, %v1553_v32 }
 0x179   : > { %969 = vrot.lane.b32.xlu1 %v3211_v16, %s3255_s27  ;;  %937 = vrot.lane.b32.xlu0 %v3212_v22, %s3255_s27  ;;  %v5502_v16 = vld [vmem:[#allocation17_spill] sm:$0xff] }
 0x17a   : > { %v1562_v7 = vcombine.high %v1560_v43, %v1560_v43  ;;  %v2074_v2 = vcombine.low %v1553_v32, %v1561_v53  ;;  %v1826_v33 = vcombine.high %v1824_v38, %v1824_v38  ;;  %v2312_v59 = vcombine.low %v1817_v26, %v1825_v34  ;;  %v5501_v53 = vld [vmem:[#allocation34_spill] sm:$0xff] }
 0x17b   : > { %v958_v30 = vpop.permute.xlu1 %957  ;;  %v926_v54 = vpop.permute.xlu0 %925 }
 0x17c   : > { %v2075_v35 = vcombine.low %v1560_v43, %v1562_v7  ;;  %v2313_v23 = vcombine.low %v1824_v38, %v1826_v33  ;;  %v2082_v45 = vrot.slane %v2074_v2, %v4447_v0  ;;  %v2320_v32 = vrot.slane %v2312_v59, %v4447_v0  ;;  %v4496_v2 = vld [vmem:[%s3308_s21 + $0x88] sm:$0xff]  ;;  %v5504_v59 = vld [vmem:[#allocation50_spill] sm:$0xff] }
 0x17d   : > { %1070 = vrot.lane.b32.xlu1 %v5500_v21, %s3256_s28  ;;  %1038 = vrot.lane.b32.xlu0 %v3429_v36, %s3256_s28 }
 0x17e   : > { %v2089_v41 = vrot.slane %v2075_v35, %v4447_v0  ;;  %v2327_v26 = vrot.slane %v2313_v23, %v4447_v0  ;;  %v3214_v35 = vld [vmem:[%s3308_s21 + $0x8] sm:$0xff] }
 0x17f   : > { %v4477_v13 = vpop.permute.xlu1 %959  ;;  %v4479_v60 = vpop.permute.xlu0 %927 }
 0x180   : > { %v2090_v34 = vcombine.low %v2082_v45, %v2089_v41  ;;  %v2328_v36 = vcombine.low %v2320_v32, %v2327_v26  ;;  %v5506_v41 = vld [vmem:[#allocation65_spill] sm:$0xff] }
 0x181   : > { %1036 = vrot.lane.b32.xlu1 %v3396_v27, %s3256_s28  ;;  %778 = vrot.lane.b32.xlu0 %v5500_v21, %s3253_s25  ;;  %v5503_v27 = vld [vmem:[#allocation55_spill] sm:$0xff]  ;;  %v5505_v21 = vld [vmem:[#allocation49_spill] sm:$0xff] }
 0x182   : > { %3096 = vmatprep.mubr.f32.mxu0 %v2090_v34  ;;  %3117 = vmatprep.mubr.f32.mxu1 %v2328_v36  ;;  %v1235_v33 = vsel %vm1217_vm2, %v4496_v2, %v5503_v27  ;;  %v1219_v23 = vsel %vm1217_vm2, %v3214_v35, %v5505_v21 }
 0x183   : > { %v1057_v38 = vpop.permute.xlu1 %1056  ;;  %v1025_v43 = vpop.permute.xlu0 %1024  ;;  %v1268_v45 = vsel %vm1250_vm3, %v1235_v33, %v4008_v10  ;;  %v1252_v32 = vsel %vm1250_vm3, %v1219_v23, %v5506_v41  ;;  %v3215_v41 = vld [vmem:[%s3308_s21 + $0x10] sm:$0xff] }
 0x184   : > { %v1301_v26 = vsel %vm1283_vm4, %v1268_v45, %v4253_v62 }
 0x185   : > { %1137 = vrot.lane.b32.xlu1 %v5501_v53, %s3257_s29  ;;  %1068 = vrot.lane.b32.xlu0 %v5502_v16, %s3256_s28  ;;  %v1334_v27 = vsel %vm1316_vm5, %v1301_v26, %v4404_v25  ;;  %v4548_v26 = vld [vmem:[%s3308_s21 + $0x90] sm:$0xff] }
 0x186   : > { %v1367_v10 = vsel %vm1349_vm6, %v1334_v27, %v4433_v3 }
 0x187   : > { %v4491_v22 = vpop.permute.xlu1 %766  ;;  %v4493_v7 = vpop.permute.xlu0 %764 }
 0x189   : > { %776 = vrot.lane.b32.xlu1 %v5502_v16, %s3253_s25  ;;  %1169 = vrot.lane.b32.xlu0 %v5504_v59, %s3257_s29  ;;  %v1285_v16 = vsel %vm1283_vm4, %v1252_v32, %v4127_v48  ;;  %v1400_v48 = vsel %vm1382_vm7, %v1367_v10, %v958_v30 }
 0x18a   : > { %v1318_v35 = vsel %vm1316_vm5, %v1285_v16, %v4352_v1  ;;  %v1433_v1 = vsel %vm1415_vm8, %v1400_v48, %v1057_v38  ;;  %v5510_v16 = vld [vmem:[#allocation57_spill] sm:$0xff] }
 0x18b   : > { %v1059_v34 = vpop.permute.xlu1 %1058  ;;  %v1027_v36 = vpop.permute.xlu0 %1026  ;;  %v1351_v62 = vsel %vm1349_vm6, %v1318_v35, %v4435_v37  ;;  %v5508_v37 = vld [vmem:[#allocation31_spill] sm:$0xff]  ;;  %v1236_v27 = vsel %vm1217_vm2, %v4548_v26, %v5510_v16 }
 0x18c   : > { %v1384_v25 = vsel %vm1382_vm7, %v1351_v62, %v926_v54  ;;  %v5511_v35 = vld [vmem:[#allocation67_spill] sm:$0xff]  ;;  %v1269_v62 = vsel %vm1250_vm3, %v1236_v27, %v4019_v11 }
 0x18d   : > { %877 = vrot.lane.b32.xlu1 %v5504_v59, %s3254_s26  ;;  %845 = vrot.lane.b32.xlu0 %v5501_v53, %s3254_s26  ;;  %v1417_v3 = vsel %vm1415_vm8, %v1384_v25, %v1025_v43  ;;  %v5507_v53 = vld [vmem:[#allocation46_spill] sm:$0xff] }
 0x18e   : > { %v5509_v43 = vld [vmem:[#allocation54_spill] sm:$0xff] }
 0x18f   : > { %v1156_v33 = vpop.permute.xlu1 %1155  ;;  %v1124_v21 = vpop.permute.xlu0 %1123  ;;  %v1220_v32 = vsel %vm1217_vm2, %v3215_v41, %v5509_v43 }
 0x190   : > { %v1466_v59 = vsel %vm1448_vm9, %v1433_v1, %v1156_v33  ;;  %v1450_v23 = vsel %vm1448_vm9, %v1417_v3, %v1124_v21  ;;  %v1253_v10 = vsel %vm1250_vm3, %v1220_v32, %v5511_v35  ;;  %v1302_v1 = vsel %vm1283_vm4, %v1269_v62, %v4267_v44  ;;  %v3218_v44 = vld [vmem:[%s3308_s21 + $0x70] sm:$0xff] }
 0x191   : > { %1167 = vrot.lane.b32.xlu1 %v5507_v53, %s3257_s29  ;;  %1135 = vrot.lane.b32.xlu0 %v5508_v37, %s3257_s29  ;;  %v1499_v30 = vsel %vm1481_vm10, %v1466_v59, 0.0  ;;  %v1483_v38 = vsel %vm1481_vm10, %v1450_v23, 0.0  ;;  %v1286_v25 = vsel %vm1283_vm4, %v1253_v10, %v4141_v28  ;;  %v1335_v11 = vsel %vm1316_vm5, %v1302_v1, %v4410_v56 }
 0x192   : > { %v1834_v48 = vrot.slane %v1499_v30, %v4447_v0  ;;  %v1570_v33 = vrot.slane %v1483_v38, %v4447_v0  ;;  %v1319_v59 = vsel %vm1316_vm5, %v1286_v25, %v4360_v39  ;;  %v1368_v23 = vsel %vm1349_vm6, %v1335_v11, %v4461_v4 }
 0x193   : > { %v4539_v45 = vpop.permute.xlu1 %833  ;;  %v4541_v54 = vpop.permute.xlu0 %831  ;;  %v1352_v28 = vsel %vm1349_vm6, %v1319_v59, %v4463_v46  ;;  %v1827_v39 = vcombine.high %v1499_v30, %v1499_v30  ;;  %v1563_v43 = vcombine.high %v1483_v38, %v1483_v38  ;;  %v3220_v30 = vld [vmem:[%s3308_s21 + $0x68] sm:$0xff] }
 0x194   : > { %v1385_v56 = vsel %vm1382_vm7, %v1352_v28, %v4479_v60  ;;  %v1842_v41 = vcombine.high %v1834_v48, %v1834_v48  ;;  %v1578_v32 = vcombine.high %v1570_v33, %v1570_v33  ;;  %v3219_v60 = vld [vmem:[%s3308_s21 + $0xe8] sm:$0xff] }
 0x195   : > { %875 = vrot.lane.b32.xlu1 %v5507_v53, %s3254_s26  ;;  %843 = vrot.lane.b32.xlu0 %v5508_v37, %s3254_s26  ;;  %v3217_v53 = vld [vmem:[%s3308_s21 + $0xf0] sm:$0xff]  ;;  %v1401_v37 = vsel %vm1382_vm7, %v1368_v23, %v4477_v13  ;;  %v1418_v46 = vsel %vm1415_vm8, %v1385_v56, %v1027_v36  ;;  %v1577_v1 = vrot.slane %v1563_v43, %v4447_v0 }
 0x196   : > { %v1434_v4 = vsel %vm1415_vm8, %v1401_v37, %v1059_v34  ;;  %v1841_v34 = vrot.slane %v1827_v39, %v4447_v0  ;;  %v2329_v36 = vcombine.low %v1834_v48, %v1842_v41  ;;  %v2091_v59 = vcombine.low %v1570_v33, %v1578_v32  ;;  %v5513_v37 = vld [vmem:[#allocation6_spill] sm:$0xff]  ;;  %v5514_v32 = vld [vmem:[#allocation4_spill] sm:$0xff] }
 0x197   : > { %v4567_v21 = vpop.permute.xlu1 %865  ;;  %v4569_v3 = vpop.permute.xlu0 %863 }
 0x198   : > { %v2337_v48 = vrot.slane %v2329_v36, %v4447_v0 }
 0x199   : > { %975 = vrot.lane.b32.xlu1 %v3217_v53, %s3255_s27  ;;  %943 = vrot.lane.b32.xlu0 %v3218_v44, %s3255_s27  ;;  %v5512_v44 = vld [vmem:[#allocation23_spill] sm:$0xff] }
 0x19b   : > { %v1158_v16 = vpop.permute.xlu1 %1157  ;;  %v1126_v27 = vpop.permute.xlu0 %1125 }
 0x19c   : > { %v1467_v35 = vsel %vm1448_vm9, %v1434_v4, %v1158_v16  ;;  %v1451_v10 = vsel %vm1448_vm9, %v1418_v46, %v1126_v27  ;;  %v2099_v4 = vrot.slane %v2091_v59, %v4447_v0  ;;  %v5517_v59 = vld [vmem:[#allocation36_spill] sm:$0xff] }
 0x19d   : > { %v4592_v13 = vsel %vm1481_vm10, %v1467_v35, 0.0  ;;  %v1484_v62 = vsel %vm1481_vm10, %v1451_v10, 0.0  ;;  %973 = vrot.lane.b32.xlu1 %v3219_v60, %s3255_s27  ;;  %941 = vrot.lane.b32.xlu0 %v3220_v30, %s3255_s27  ;;  %v5515_v35 = vld [vmem:[#allocation20_spill] sm:$0xff] }
 0x19e   : > { %v4602_v38 = vrot.slane %v4592_v13, %v4447_v0  ;;  %v1586_v25 = vrot.slane %v1484_v62, %v4447_v0  ;;  %v1579_v36 = vcombine.high %v1484_v62, %v1484_v62 }
 0x19f   : > { %v932_v11 = vpop.permute.xlu1 %931  ;;  %v930_v23 = vpop.permute.xlu0 %929 }
 0x1a0   : > { %v2330_v28 = vcombine.low %v1841_v34, %v4602_v38  ;;  %v2092_v53 = vcombine.low %v1577_v1, %v1586_v25  ;;  %v5516_v1 = vld [vmem:[#allocation53_spill] sm:$0xff] }
 0x1a1   : > { %1074 = vrot.lane.b32.xlu1 %v5512_v44, %s3256_s28  ;;  %1042 = vrot.lane.b32.xlu0 %v5513_v37, %s3256_s28 }
 0x1a2   : > { %v2344_v56 = vrot.slane %v2330_v28, %v4447_v0  ;;  %v2106_v33 = vrot.slane %v2092_v53, %v4447_v0  ;;  %v1321_v28 = vsel %vm1316_vm5, %v4163_v55, %v4368_v19  ;;  %v1594_v55 = vcombine.high %v1586_v25, %v1586_v25 }
 0x1a3   : > { %v964_v39 = vpop.permute.xlu1 %963  ;;  %v962_v41 = vpop.permute.xlu0 %961  ;;  %v1354_v62 = vsel %vm1349_vm6, %v1321_v28, %v4539_v45  ;;  %v1336_v45 = vsel %vm1316_vm5, %v4271_v14, %v4493_v7 }
 0x1a4   : > { %v2345_v46 = vcombine.low %v2337_v48, %v2344_v56  ;;  %v2107_v43 = vcombine.low %v2099_v4, %v2106_v33  ;;  %v1843_v56 = vcombine.high %v4592_v13, %v4592_v13  ;;  %v1593_v4 = vrot.slane %v1579_v36, %v4447_v0 }
 0x1a5   : > { %750 = vrot.lane.b32.xlu1 %v5513_v37, %s3253_s25  ;;  %748 = vrot.lane.b32.xlu0 %v5514_v32, %s3253_s25  ;;  %v1320_v37 = vsel %vm1316_vm5, %v4145_v18, %v4358_v63  ;;  %v1387_v19 = vsel %vm1382_vm7, %v1354_v62, %v932_v11  ;;  %v5518_v18 = vld [vmem:[#allocation33_spill] sm:$0xff]  ;;  %v1337_v63 = vsel %vm1316_vm5, %v4286_v9, %v4491_v22 }
 0x1a6   : > { %3118 = vmatmul.mubr.f32.vlgmr.msra.gmra.mxu1 %v2345_v46  ;;  %3097 = vmatmul.mubr.f32.vlgmr.msra.gmra.mxu0 %v2107_v43  ;;  %v1353_v48 = vsel %vm1349_vm6, %v1320_v37, %v4541_v54  ;;  %v1370_v11 = vsel %vm1349_vm6, %v1337_v63, %v4567_v21  ;;  %v1857_v22 = vrot.slane %v1843_v56, %v4447_v0 }
 0x1a7   : > { %v1029_v16 = vpop.permute.xlu1 %1028  ;;  %v4619_v27 = vpop.permute.xlu0 %768  ;;  %v1386_v33 = vsel %vm1382_vm7, %v1353_v48, %v930_v23  ;;  %v1369_v23 = vsel %vm1349_vm6, %v1336_v45, %v4569_v3  ;;  %v1858_v36 = vcombine.high %v4602_v38, %v4602_v38  ;;  %v1595_v37 = vcombine.high %v1593_v4, %v1593_v4 }
 0x1a8   : > { %v1419_v54 = vsel %vm1415_vm8, %v1386_v33, %v1029_v16  ;;  %v1402_v21 = vsel %vm1382_vm7, %v1369_v23, %v962_v41 }
 0x1a9   : > { %782 = vrot.lane.b32.xlu1 %v5512_v44, %s3253_s25  ;;  %780 = vrot.lane.b32.xlu0 %v5515_v35, %s3253_s25 }
 0x1ab   : > { %v1061_v10 = vpop.permute.xlu1 %1060  ;;  %v1031_v60 = vpop.permute.xlu0 %1030 }
 0x1ac   : > { %v1420_v13 = vsel %vm1415_vm8, %v1387_v19, %v1031_v60  ;;  %v5519_v60 = vld [vmem:[#allocation48_spill] sm:$0xff]  ;;  %v1435_v28 = vsel %vm1415_vm8, %v1402_v21, %v1061_v10 }
 0x1ad   : > { %1072 = vrot.lane.b32.xlu1 %v5515_v35, %s3256_s28  ;;  %1040 = vrot.lane.b32.xlu0 %v5514_v32, %s3256_s28  ;;  %v2108_v32 = vcombine.low %v1594_v55, %v1593_v4 }
 0x1af   : > { %v4629_v30 = vpop.permute.xlu1 %770  ;;  %v1063_v34 = vpop.permute.xlu0 %1062  ;;  %v2116_v10 = vrot.slane %v2108_v32, %v4447_v0 }
 0x1b1   : > { %1173 = vrot.lane.b32.xlu1 %v5516_v1, %s3257_s29  ;;  %1141 = vrot.lane.b32.xlu0 %v5517_v59, %s3257_s29 }
 0x1b3   : > { %v4638_v53 = vpop.permute.xlu1 %867  ;;  %v4640_v44 = vpop.permute.xlu0 %835 }
 0x1b5   : > { %849 = vrot.lane.b32.xlu1 %v5517_v59, %s3254_s26  ;;  %847 = vrot.lane.b32.xlu0 %v5518_v18, %s3254_s26  ;;  %v1403_v59 = vsel %vm1382_vm7, %v1370_v11, %v964_v39  ;;  %v1859_v11 = vcombine.high %v1857_v22, %v1857_v22 }
 0x1b6   : > { %v1436_v41 = vsel %vm1415_vm8, %v1403_v59, %v1063_v34 }
 0x1b7   : > { %v1130_v25 = vpop.permute.xlu1 %1129  ;;  %v1128_v46 = vpop.permute.xlu0 %1127 }
 0x1b8   : > { %v1453_v43 = vsel %vm1448_vm9, %v1420_v13, %v1130_v25  ;;  %v1452_v9 = vsel %vm1448_vm9, %v1419_v54, %v1128_v46  ;;  %v2346_v46 = vcombine.low %v1858_v36, %v1857_v22 }
 0x1b9   : > { %v4674_v14 = vsel %vm1481_vm10, %v1453_v43, 0.0  ;;  %v1485_v7 = vsel %vm1481_vm10, %v1452_v9, 0.0  ;;  %881 = vrot.lane.b32.xlu1 %v5516_v1, %s3254_s26  ;;  %879 = vrot.lane.b32.xlu0 %v5519_v60, %s3254_s26  ;;  %v5520_v9 = vld [vmem:[#allocation22_spill] sm:$0xff] }
 0x1ba   : > { %v1619_v3 = vrot.slane %v4674_v14, %v4447_v0  ;;  %v1596_v16 = vcombine.high %v1485_v7, %v1485_v7  ;;  %v1603_v35 = vrot.slane %v1485_v7, %v4447_v0 }
 0x1bb   : > { %v1162_v1 = vpop.permute.xlu1 %1161  ;;  %v1160_v62 = vpop.permute.xlu0 %1159 }
 0x1bc   : > { %v1627_v48 = vcombine.high %v1619_v3, %v1619_v3  ;;  %v1610_v56 = vrot.slane %v1596_v16, %v4447_v0  ;;  %v1611_v55 = vcombine.high %v1603_v35, %v1603_v35  ;;  %v2109_v19 = vcombine.low %v1595_v37, %v1603_v35  ;;  %v5521_v16 = vld [vmem:[#allocation5_spill] sm:$0xff] }
 0x1bd   : > { %v1469_v33 = vsel %vm1448_vm9, %v1436_v41, %v1162_v1  ;;  %v1468_v63 = vsel %vm1448_vm9, %v1435_v28, %v1160_v62  ;;  %1171 = vrot.lane.b32.xlu1 %v5519_v60, %s3257_s29  ;;  %1139 = vrot.lane.b32.xlu0 %v5518_v18, %s3257_s29  ;;  %v2354_v37 = vrot.slane %v2346_v46, %v4447_v0 }
 0x1be   : > { %v2125_v38 = vcombine.low %v1611_v55, %v1610_v56  ;;  %v4696_v39 = vsel %vm1481_vm10, %v1469_v33, 0.0  ;;  %v2126_v34 = vcombine.low %v1619_v3, %v1627_v48  ;;  %v1501_v45 = vsel %vm1481_vm10, %v1468_v63, 0.0  ;;  %v3221_v48 = vld [vmem:[%s3308_s21 + $0x78] sm:$0xff] }
 0x1bf   : > { %v1883_v4 = vrot.slane %v4696_v39, %v4447_v0  ;;  %v4704_v54 = vpop.permute.xlu1 %869  ;;  %v4706_v13 = vpop.permute.xlu0 %837  ;;  %v2123_v25 = vrot.slane %v2109_v19, %v4447_v0  ;;  %v1860_v23 = vcombine.high %v1501_v45, %v1501_v45  ;;  %v1867_v43 = vrot.slane %v1501_v45, %v4447_v0  ;;  %v3224_v45 = vld [vmem:[%s3308_s21 + $0x108] sm:$0xff] }
 0x1c0   : > { %v2133_v35 = vrot.slane %v2125_v38, %v4447_v0  ;;  %v2140_v59 = vrot.slane %v2126_v34, %v4447_v0  ;;  %v4730_v38 = vld [vmem:[%s3308_s21 + $0x100] sm:$0xff] }
 0x1c1   : > { %v1891_v18 = vcombine.high %v1883_v4, %v1883_v4  ;;  %784 = vrot.lane.b32.xlu1 %v5520_v9, %s3253_s25  ;;  %v2124_v32 = vcombine.low %v2116_v10, %v2123_v25  ;;  %v1874_v7 = vrot.slane %v1860_v23, %v4447_v0  ;;  %v1875_v21 = vcombine.high %v1867_v43, %v1867_v43 }
 0x1c2   : > { %v2347_v3 = vcombine.low %v1859_v11, %v1867_v43  ;;  %752 = vrot.lane.b32.xlu0 %v5521_v16, %s3253_s25  ;;  %v2141_v62 = vcombine.low %v2133_v35, %v2140_v59  ;;  %v4741_v25 = vrot.slane %v3224_v45, 1  ;;  %v723_v46 = vrot.slane %v4730_v38, 1  ;;  %v5523_v11 = vld [vmem:[#allocation35_spill] sm:$0xff] }
 0x1c3   : > { %v2364_v60 = vcombine.low %v1883_v4, %v1891_v18  ;;  %3099 = vmatprep.mubr.f32.mxu0 %v2124_v32  ;;  %v966_v22 = vpop.permute.xlu1 %965  ;;  %v934_v36 = vpop.permute.xlu0 %933  ;;  %v2363_v28 = vcombine.low %v1875_v21, %v1874_v7  ;;  %v5522_v4 = vld [vmem:[#allocation51_spill] sm:$0xff]  ;;  %v5524_v18 = vld [vmem:[#allocation8_spill] sm:$0xff]  ;;  %v1876_v35 = vcombine.high %v4696_v39, %v4696_v39  ;;  %v1322_v59 = vsel %vm1316_vm5, %v4159_v42, %v4366_v20 }
 0x1c4   : > { %v2361_v1 = vrot.slane %v2347_v3, %v4447_v0  ;;  %3100 = vmatmul.mubr.f32.gmra.mxu0 %v2141_v62  ;;  %v725_v32 = vsel %vm335_vm0, %v723_v46, %v4741_v25  ;;  %v1612_v3 = vcombine.high %v4674_v14, %v4674_v14 }
 0x1c5   : > { %947 = vrot.lane.b32.xlu1 %v4416_v31, %s3255_s27  ;;  %v2378_v41 = vrot.slane %v2364_v60, %v4447_v0  ;;  %v2371_v55 = vrot.slane %v2363_v28, %v4447_v0  ;;  %v3223_v31 = vld [vmem:[%s3308_s21 + $0xf8] sm:$0xff]  ;;  %v1338_v28 = vsel %vm1316_vm5, %v4282_v8, %v4619_v27 }
 0x1c6   : > { %945 = vrot.lane.b32.xlu0 %v3221_v48, %s3255_s27  ;;  %v2362_v56 = vcombine.low %v2354_v37, %v2361_v1  ;;  %v1626_v14 = vrot.slane %v1612_v3, %v4447_v0  ;;  %v1890_v37 = vrot.slane %v1876_v35, %v4447_v0  ;;  %v1371_v39 = vsel %vm1349_vm6, %v1338_v28, %v4638_v53 }
 0x1c7   : > { %v4725_v19 = vpop.permute.xlu1 %935  ;;  %v4727_v33 = vpop.permute.xlu0 %774  ;;  %v2379_v63 = vcombine.low %v2371_v55, %v2378_v41  ;;  %v1404_v1 = vsel %vm1382_vm7, %v1371_v39, %v966_v22  ;;  %v822_v55 = vrot.slane %v4730_v38, 2  ;;  %v1339_v28 = vsel %vm1316_vm5, %v4298_v15, %v4629_v30 }
 0x1c8   : > { %3120 = vmatprep.mubr.f32.mxu1 %v2362_v56  ;;  %v1628_v41 = vcombine.high %v1626_v14, %v1626_v14  ;;  %v1892_v53 = vcombine.high %v1890_v37, %v1890_v37 }
 0x1c9   : > { %979 = vrot.lane.b32.xlu1 %v4730_v38, %s3255_s27  ;;  %3121 = vmatmul.mubr.f32.gmra.mxu1 %v2379_v63 }
 0x1ca   : > { %977 = vrot.lane.b32.xlu0 %v3223_v31, %s3255_s27 }
 0x1cb   : > { %v1033_v10 = vpop.permute.xlu1 %1032  ;;  %v4736_v34 = vpop.permute.xlu0 %967 }
 0x1cd   : > { %883 = vrot.lane.b32.xlu1 %v5522_v4, %s3254_s26 }
 0x1ce   : > { %851 = vrot.lane.b32.xlu0 %v5523_v11, %s3254_s26 }
 0x1cf   : > { %v4746_v23 = vpop.permute.xlu1 %772  ;;  %v1065_v43 = vpop.permute.xlu0 %1064 }
 0x1d0   : > { %v1437_v20 = vsel %vm1415_vm8, %v1404_v1, %v1065_v43  ;;  %v2142_v43 = vcombine.low %v1626_v14, %v1628_v41 }
 0x1d1   : > { %1046 = vrot.lane.b32.xlu1 %v5524_v18, %s3256_s28 }
 0x1d2   : > { %1044 = vrot.lane.b32.xlu0 %v5521_v16, %s3256_s28  ;;  %v2150_v39 = vrot.slane %v2142_v43, %v4447_v0 }
 0x1d3   : > { %v4754_v7 = vpop.permute.xlu1 %873  ;;  %v4756_v21 = vpop.permute.xlu0 %841 }
 0x1d5   : > { %1078 = vrot.lane.b32.xlu1 %v725_v32, %s3256_s28 }
 0x1d6   : > { %1076 = vrot.lane.b32.xlu0 %v5520_v9, %s3256_s28  ;;  %v1355_v9 = vsel %vm1349_vm6, %v1322_v59, %v4640_v44 }
 0x1d7   : > { %v1067_v60 = vpop.permute.xlu1 %1066  ;;  %v1035_v16 = vpop.permute.xlu0 %1034  ;;  %v1388_v42 = vsel %vm1382_vm7, %v1355_v9, %v934_v36  ;;  %v4789_v36 = vrot.slane %v3224_v45, 2 }
 0x1d8   : > { %v1421_v8 = vsel %vm1415_vm8, %v1388_v42, %v1033_v10  ;;  %v1372_v42 = vsel %vm1349_vm6, %v1339_v28, %v4704_v54 }
 0x1d9   : > { %786 = vrot.lane.b32.xlu1 %v725_v32, %s3253_s25  ;;  %v824_v59 = vsel %vm480_vm1, %v822_v55, %v4789_v36  ;;  %v1405_v30 = vsel %vm1382_vm7, %v1372_v42, %v4736_v34 }
 0x1da   : > { %754 = vrot.lane.b32.xlu0 %v5524_v18, %s3253_s25  ;;  %v2380_v18 = vcombine.low %v1890_v37, %v1892_v53 }
 0x1db   : > { %v1164_v27 = vpop.permute.xlu1 %1163  ;;  %v1132_v62 = vpop.permute.xlu0 %1131 }
 0x1dc   : > { %v1470_v48 = vsel %vm1448_vm9, %v1437_v20, %v1164_v27  ;;  %v1454_v44 = vsel %vm1448_vm9, %v1421_v8, %v1132_v62  ;;  %v1438_v27 = vsel %vm1415_vm8, %v1405_v30, %v1067_v60 }
 0x1dd   : > { %v1503_v56 = vsel %vm1481_vm10, %v1470_v48, 0.0  ;;  %v1487_v22 = vsel %vm1481_vm10, %v1454_v44, 0.0  ;;  %981 = vrot.lane.b32.xlu1 %v3224_v45, %s3255_s27  ;;  %v5525_v45 = vld [vmem:[#allocation38_spill] sm:$0xff] }
 0x1de   : > { %v1900_v63 = vrot.slane %v1503_v56, %v4447_v0  ;;  %v1636_v31 = vrot.slane %v1487_v22, %v4447_v0  ;;  %949 = vrot.lane.b32.xlu0 %v4496_v2, %s3255_s27  ;;  %v1323_v2 = vsel %vm1316_vm5, %v4178_v50, %v4376_v17  ;;  %v1893_v17 = vcombine.high %v1503_v56, %v1503_v56 }
 0x1df   : > { %v4796_v10 = vpop.permute.xlu1 %871  ;;  %v4798_v46 = vpop.permute.xlu0 %839  ;;  %v1356_v50 = vsel %vm1349_vm6, %v1323_v2, %v4706_v13  ;;  %v1629_v62 = vcombine.high %v1487_v22, %v1487_v22 }
 0x1e0   : > { %v1908_v32 = vcombine.high %v1900_v63, %v1900_v63  ;;  %v1644_v3 = vcombine.high %v1636_v31, %v1636_v31  ;;  %v1389_v15 = vsel %vm1382_vm7, %v1356_v50, %v4725_v19  ;;  %v1907_v19 = vrot.slane %v1893_v17, %v4447_v0  ;;  %v301_v50 = vld [vmem:[%s3308_s21 + $0x110] sm:$0xff] }
 0x1e1   : > { %1145 = vrot.lane.b32.xlu1 %v5525_v45, %s3257_s29  ;;  %v1422_v54 = vsel %vm1415_vm8, %v1389_v15, %v1035_v16  ;;  %v1643_v22 = vrot.slane %v1629_v62, %v4447_v0 }
 0x1e2   : > { %v2381_v35 = vcombine.low %v1900_v63, %v1908_v32  ;;  %v2143_v38 = vcombine.low %v1636_v31, %v1644_v3  ;;  %1143 = vrot.lane.b32.xlu0 %v5523_v11, %s3257_s29  ;;  %v2388_v11 = vrot.slane %v2380_v18, %v4447_v0 }
 0x1e3   : > { %v4812_v14 = vpop.permute.xlu1 %971  ;;  %v4814_v37 = vpop.permute.xlu0 %939 }
 0x1e4   : > { %v2157_v9 = vrot.slane %v2143_v38, %v4447_v0  ;;  %v2395_v1 = vrot.slane %v2381_v35, %v4447_v0  ;;  %v5526_v38 = vld [vmem:[#allocation7_spill] sm:$0xff] }
 0x1e5   : > { %1177 = vrot.lane.b32.xlu1 %v824_v59, %s3257_s29 }
 0x1e6   : > { %1175 = vrot.lane.b32.xlu0 %v5522_v4, %s3257_s29  ;;  %v2158_v8 = vcombine.low %v2150_v39, %v2157_v9  ;;  %v2396_v20 = vcombine.low %v2388_v11, %v2395_v1 }
 0x1e7   : > { %v1166_v13 = vpop.permute.xlu1 %1165  ;;  %v1134_v41 = vpop.permute.xlu0 %1133 }
 0x1e8   : > { %v1471_v53 = vsel %vm1448_vm9, %v1438_v27, %v1166_v13  ;;  %v1455_v48 = vsel %vm1448_vm9, %v1422_v54, %v1134_v41  ;;  %3102 = vmatprep.mubr.f32.mxu0 %v2158_v8  ;;  %3123 = vmatprep.mubr.f32.mxu1 %v2396_v20  ;;  %v1325_v8 = vsel %vm1316_vm5, %v4196_v6, %v4384_v49  ;;  %v4883_v13 = vld [vmem:[%s3308_s21 + $0x118] sm:$0xff]  ;;  %v1019_v41 = vrot.slane %v301_v50, 1 }
 0x1e9   : > { %v1504_v34 = vsel %vm1481_vm10, %v1471_v53, 0.0  ;;  %v1488_v4 = vsel %vm1481_vm10, %v1455_v48, 0.0  ;;  %885 = vrot.lane.b32.xlu1 %v824_v59, %s3254_s26  ;;  %v1341_v6 = vsel %vm1316_vm5, %v4310_v24, %v4727_v33  ;;  %v5527_v53 = vld [vmem:[#allocation37_spill] sm:$0xff]  ;;  %v1020_v48 = vrot.slane %v4883_v13, 1 }
 0x1ea   : > { %v1909_v60 = vcombine.high %v1504_v34, %v1504_v34  ;;  %v1916_v16 = vrot.slane %v1504_v34, %v4447_v0  ;;  %v1645_v44 = vcombine.high %v1488_v4, %v1488_v4  ;;  %v1652_v56 = vrot.slane %v1488_v4, %v4447_v0  ;;  %853 = vrot.lane.b32.xlu0 %v5525_v45, %s3254_s26 }
 0x1eb   : > { %v4844_v55 = vpop.permute.xlu1 %969  ;;  %v4846_v63 = vpop.permute.xlu0 %937 }
 0x1ec   : > { %v4849_v31 = vrot.slane %v1909_v60, %v4447_v0  ;;  %v1924_v43 = vcombine.high %v1916_v16, %v1916_v16  ;;  %v2397_v18 = vcombine.low %v1907_v19, %v1916_v16  ;;  %v4852_v32 = vrot.slane %v1645_v44, %v4447_v0 }
 0x1ed   : > { %v1660_v3 = vcombine.high %v1652_v56, %v1652_v56  ;;  %v2159_v35 = vcombine.low %v1643_v22, %v1652_v56  ;;  %1080 = vrot.lane.b32.xlu1 %v4741_v25, %s3256_s28  ;;  %v1021_v60 = vsel %vm335_vm0, %v1019_v41, %v1020_v48  ;;  %v1324_v22 = vsel %vm1316_vm5, %v4174_v40, %v4374_v57 }
 0x1ee   : > { %v2398_v45 = vcombine.low %v1924_v43, %v4849_v31  ;;  %1048 = vrot.lane.b32.xlu0 %v5526_v38, %s3256_s28  ;;  %v2405_v39 = vrot.slane %v2397_v18, %v4447_v0  ;;  %v1118_v43 = vrot.slane %v301_v50, 2  ;;  %v1119_v18 = vrot.slane %v4883_v13, 2 }
 0x1ef   : > { %v2160_v59 = vcombine.low %v1660_v3, %v4852_v32  ;;  %v1071_v2 = vpop.permute.xlu1 %1070  ;;  %v1039_v28 = vpop.permute.xlu0 %1038  ;;  %v2167_v11 = vrot.slane %v2159_v35, %v4447_v0  ;;  %v1357_v35 = vsel %vm1349_vm6, %v1324_v22, %v4798_v46 }
 0x1f0   : > { %v2412_v9 = vrot.slane %v2398_v45, %v4447_v0 }
 0x1f1   : > { %788 = vrot.lane.b32.xlu1 %v4741_v25, %s3253_s25  ;;  %v2174_v1 = vrot.slane %v2160_v59, %v4447_v0  ;;  %v1358_v25 = vsel %vm1349_vm6, %v1325_v8, %v4756_v21  ;;  %v1374_v21 = vsel %vm1349_vm6, %v1341_v6, %v4754_v7 }
 0x1f2   : > { %756 = vrot.lane.b32.xlu0 %v5526_v38, %s3253_s25  ;;  %v2413_v42 = vcombine.low %v2405_v39, %v2412_v9  ;;  %v1391_v20 = vsel %vm1382_vm7, %v1358_v25, %v4814_v37 }
 0x1f3   : > { %v1037_v17 = vpop.permute.xlu1 %1036  ;;  %v4869_v15 = vpop.permute.xlu0 %778  ;;  %v2175_v30 = vcombine.low %v2167_v11, %v2174_v1  ;;  %v1424_v27 = vsel %vm1415_vm8, %v1391_v20, %v1039_v28  ;;  %v1661_v20 = vcombine.high %v4852_v32, %v4852_v32 }
 0x1f4   : > { %3124 = vmatmul.mubr.f32.gmra.mxu1 %v2413_v42 }
 0x1f5   : > { %3103 = vmatmul.mubr.f32.gmra.mxu0 %v2175_v30  ;;  %983 = vrot.lane.b32.xlu1 %v301_v50, %s3255_s27  ;;  %v3225_v30 = vld [vmem:[%s3308_s21 + $0x98] sm:$0xff]  ;;  %s3171_s21 = smul.u32 224, %s5546_s15 }
 0x1f6   : > { %951 = vrot.lane.b32.xlu0 %v4548_v26, %s3255_s27  ;;  %v1407_v26 = vsel %vm1382_vm7, %v1374_v21, %v4812_v14 }
 0x1f7   : > { %v1138_v54 = vpop.permute.xlu1 %1137  ;;  %v1069_v62 = vpop.permute.xlu0 %1068  ;;  %v1440_v24 = vsel %vm1415_vm8, %v1407_v26, %v1071_v2 }
 0x1f8   : > { %v1457_v49 = vsel %vm1448_vm9, %v1424_v27, %v1138_v54 }
 0x1f9   : > { %v1490_v37 = vsel %vm1481_vm10, %v1457_v49, 0.0  ;;  %1179 = vrot.lane.b32.xlu1 %v4789_v36, %s3257_s29 }
 0x1fa   : > { %1147 = vrot.lane.b32.xlu0 %v5527_v53, %s3257_s29  ;;  %v1678_v33 = vcombine.high %v1490_v37, %v1490_v37  ;;  %v1685_v45 = vrot.slane %v1490_v37, %v4447_v0 }
 0x1fb   : > { %v4900_v19 = vpop.permute.xlu1 %776  ;;  %v1170_v7 = vpop.permute.xlu0 %1169 }
 0x1fc   : > { %v1473_v34 = vsel %vm1448_vm9, %v1440_v24, %v1170_v7  ;;  %v1692_v16 = vrot.slane %v1678_v33, %v4447_v0  ;;  %v1693_v39 = vcombine.high %v1685_v45, %v1685_v45 }
 0x1fd   : > { %v1506_v4 = vsel %vm1481_vm10, %v1473_v34, 0.0  ;;  %887 = vrot.lane.b32.xlu1 %v4789_v36, %s3254_s26  ;;  %v1340_v36 = vsel %vm1316_vm5, %v4294_v52, %v4746_v23  ;;  %v1390_v52 = vsel %vm1382_vm7, %v1357_v35, %v4846_v63 }
 0x1fe   : > { %v1942_v14 = vcombine.high %v1506_v4, %v1506_v4  ;;  %855 = vrot.lane.b32.xlu0 %v5527_v53, %s3254_s26  ;;  %v1373_v3 = vsel %vm1349_vm6, %v1340_v36, %v4796_v10  ;;  %v1423_v57 = vsel %vm1415_vm8, %v1390_v52, %v1037_v17  ;;  %v1694_v23 = vcombine.high %v1692_v16, %v1692_v16 }
 0x1ff   : > { %v4912_v44 = vpop.permute.xlu1 %877  ;;  %v4914_v56 = vpop.permute.xlu0 %845  ;;  %v1406_v40 = vsel %vm1382_vm7, %v1373_v3, %v4844_v55  ;;  %v1949_v46 = vrot.slane %v1506_v4, %v4447_v0  ;;  %v1925_v55 = vcombine.high %v4849_v31, %v4849_v31  ;;  %v2193_v53 = vcombine.low %v1685_v45, %v1693_v39 }
 0x200   : > { %v1956_v38 = vrot.slane %v1942_v14, %v4447_v0  ;;  %v1439_v10 = vsel %vm1415_vm8, %v1406_v40, %v1069_v62  ;;  %v2194_v8 = vcombine.low %v1692_v16, %v1694_v23 }
 0x201   : > { %1082 = vrot.lane.b32.xlu1 %v1021_v60, %s3256_s28  ;;  %v1957_v25 = vcombine.high %v1949_v46, %v1949_v46 }
 0x202   : > { %1050 = vrot.lane.b32.xlu0 %v3483_v51, %s3256_s28  ;;  %v1120_v51 = vsel %vm480_vm1, %v1118_v43, %v1119_v18  ;;  %v1958_v9 = vcombine.high %v1956_v38, %v1956_v38  ;;  %v2208_v60 = vrot.slane %v2194_v8, %v4447_v0  ;;  %v2201_v43 = vrot.slane %v2193_v53, %v4447_v0 }
 0x203   : > { %v1168_v59 = vpop.permute.xlu1 %1167  ;;  %v1136_v2 = vpop.permute.xlu0 %1135  ;;  %v2431_v32 = vcombine.low %v1949_v46, %v1957_v25 }
 0x204   : > { %v1472_v28 = vsel %vm1448_vm9, %v1439_v10, %v1168_v59  ;;  %v1456_v63 = vsel %vm1448_vm9, %v1423_v57, %v1136_v2  ;;  %v2432_v37 = vcombine.low %v1956_v38, %v1958_v9  ;;  %v2209_v40 = vcombine.low %v2201_v43, %v2208_v60  ;;  %v5528_v9 = vld [vmem:[#allocation39_spill] sm:$0xff] }
 0x205   : > { %v1505_v11 = vsel %vm1481_vm10, %v1472_v28, 0.0  ;;  %v1489_v1 = vsel %vm1481_vm10, %v1456_v63, 0.0  ;;  %985 = vrot.lane.b32.xlu1 %v4883_v13, %s3255_s27  ;;  %v2439_v38 = vrot.slane %v2431_v32, %v4447_v0  ;;  %v1327_v63 = vsel %vm1316_vm5, %v4211_v5, %v4390_v12 }
 0x206   : > { %v1926_v42 = vcombine.high %v1505_v11, %v1505_v11  ;;  %v1933_v50 = vrot.slane %v1505_v11, %v4447_v0  ;;  %v1662_v17 = vcombine.high %v1489_v1, %v1489_v1  ;;  %v1669_v31 = vrot.slane %v1489_v1, %v4447_v0  ;;  %953 = vrot.lane.b32.xlu0 %v3225_v30, %s3255_s27 }
 0x207   : > { %v876_v27 = vpop.permute.xlu1 %875  ;;  %v4956_v54 = vpop.permute.xlu0 %843  ;;  %v1342_v11 = vsel %vm1316_vm5, %v5528_v9, %v4900_v19  ;;  %v1360_v1 = vsel %vm1349_vm6, %v1327_v63, %v4914_v56 }
 0x208   : > { %v1940_v62 = vrot.slane %v1926_v42, %v4447_v0  ;;  %v1941_v6 = vcombine.high %v1933_v50, %v1933_v50  ;;  %v2414_v49 = vcombine.low %v1925_v55, %v1933_v50  ;;  %v1676_v21 = vrot.slane %v1662_v17, %v4447_v0 }
 0x209   : > { %v1677_v26 = vcombine.high %v1669_v31, %v1669_v31  ;;  %v2176_v41 = vcombine.low %v1661_v20, %v1669_v31  ;;  %1181 = vrot.lane.b32.xlu1 %v1120_v51, %s3257_s29  ;;  %v1375_v12 = vsel %vm1349_vm6, %v1342_v11, %v876_v27 }
 0x20a   : > { %v2415_v24 = vcombine.low %v1941_v6, %v1940_v62  ;;  %1149 = vrot.lane.b32.xlu0 %v3698_v58, %s3257_s29  ;;  %v2422_v4 = vrot.slane %v2414_v49, %v4447_v0  ;;  %v2446_v58 = vrot.slane %v2432_v37, %v4447_v0 }
 0x20b   : > { %v2177_v33 = vcombine.low %v1677_v26, %v1676_v21  ;;  %v976_v7 = vpop.permute.xlu1 %975  ;;  %v944_v34 = vpop.permute.xlu0 %943  ;;  %v2184_v16 = vrot.slane %v2176_v41, %v4447_v0 }
 0x20c   : > { %v2429_v14 = vrot.slane %v2415_v24, %v4447_v0 }
 0x20d   : > { %1084 = vrot.lane.b32.xlu1 %v1020_v48, %s3256_s28  ;;  %v2191_v22 = vrot.slane %v2177_v33, %v4447_v0  ;;  %v2447_v48 = vcombine.low %v2439_v38, %v2446_v58 }
 0x20e   : > { %1052 = vrot.lane.b32.xlu0 %v3468_v47, %s3256_s28  ;;  %v2430_v36 = vcombine.low %v2422_v4, %v2429_v14  ;;  %s5137_s28 = scalar_lea.vmem %s5288_s4, %s3171_s21 }
 0x20f   : > { %v974_v3 = vpop.permute.xlu1 %973  ;;  %v942_v35 = vpop.permute.xlu0 %941  ;;  %v2192_v45 = vcombine.low %v2184_v16, %v2191_v22 }
 0x210   : > { %3126 = vmatprep.mubr.f32.mxu1 %v2430_v36  ;;  %v1408_v31 = vsel %vm1382_vm7, %v1375_v12, %v974_v3  ;;  %v5531_v12 = vld [vmem:[#allocation14_spill] sm:$0xff] }
 0x211   : > { %3105 = vmatprep.mubr.f32.mxu0 %v2192_v45  ;;  %1183 = vrot.lane.b32.xlu1 %v1119_v18, %s3257_s29 }
 0x212   : > { %1151 = vrot.lane.b32.xlu0 %v5455_v61, %s3257_s29  ;;  %3106 = vmatmul.mubr.f32.gmra.mxu0 %v2209_v40  ;;  %v1343_v61 = vsel %vm1316_vm5, %v4322_v29, %v4869_v15  ;;  %v5529_v29 = vld [vmem:[#allocation26_spill] sm:$0xff] }
 0x213   : > { %3127 = vmatmul.mubr.f32.gmra.mxu1 %v2447_v48  ;;  %v1075_v47 = vpop.permute.xlu1 %1074  ;;  %v1043_v52 = vpop.permute.xlu0 %1042  ;;  %v1376_v51 = vsel %vm1349_vm6, %v1343_v61, %v4912_v44  ;;  %v5530_v15 = vld [vmem:[#allocation58_spill] sm:$0xff]  ;;  %v1393_v44 = vsel %vm1382_vm7, %v1360_v1, %v944_v34 }
 0x214   : > { %v1409_v42 = vsel %vm1382_vm7, %v1376_v51, %v976_v7  ;;  %v1326_v5 = vsel %vm1316_vm5, %v5530_v15, %v5529_v29  ;;  %v1426_v56 = vsel %vm1415_vm8, %v1393_v44, %v1043_v52 }
 0x215   : > { %v1442_v17 = vsel %vm1415_vm8, %v1409_v42, %v1075_v47  ;;  %v1359_v19 = vsel %vm1349_vm6, %v1326_v5, %v4956_v54 }
 0x216   : > { %v1392_v8 = vsel %vm1382_vm7, %v1359_v19, %v942_v35 }
 0x217   : > { %v4981_v57 = vpop.permute.xlu1 %750  ;;  %v4983_v23 = vpop.permute.xlu0 %748 }
 0x218   : > { %v1329_v44 = vsel %vm1316_vm5, %v5531_v12, %v4981_v57 }
 0x21b   : > { %v4985_v10 = vpop.permute.xlu1 %782  ;;  %v4987_v46 = vpop.permute.xlu0 %780 }
 0x21f   : > { %v1073_v59 = vpop.permute.xlu1 %1072  ;;  %v1041_v2 = vpop.permute.xlu0 %1040 }
 0x220   : > { %v1441_v25 = vsel %vm1415_vm8, %v1408_v31, %v1073_v59  ;;  %v1425_v62 = vsel %vm1415_vm8, %v1392_v8, %v1041_v2  ;;  %v5532_v31 = vld [vmem:[#allocation59_spill] sm:$0xff] }
 0x223   : > { %v1174_v13 = vpop.permute.xlu1 %1173  ;;  %v1142_v18 = vpop.permute.xlu0 %1141 }
 0x224   : > { %v1475_v30 = vsel %vm1448_vm9, %v1442_v17, %v1174_v13  ;;  %v1459_v20 = vsel %vm1448_vm9, %v1426_v56, %v1142_v18  ;;  %v1328_v56 = vsel %vm1316_vm5, %v5532_v31, %v4983_v23 }
 0x225   : > { %v1508_v54 = vsel %vm1481_vm10, %v1475_v30, 0.0  ;;  %v1492_v26 = vsel %vm1481_vm10, %v1459_v20, 0.0 }
 0x226   : > { %v5037_v34 = vrot.slane %v1508_v54, %v4447_v0  ;;  %v1718_v16 = vrot.slane %v1492_v26, %v4447_v0  ;;  %v1711_v15 = vcombine.high %v1492_v26, %v1492_v26  ;;  %v1975_v17 = vcombine.high %v1508_v54, %v1508_v54 }
 0x227   : > { %v4989_v28 = vpop.permute.xlu1 %849  ;;  %v4991_v55 = vpop.permute.xlu0 %847 }
 0x228   : > { %v1362_v30 = vsel %vm1349_vm6, %v1329_v44, %v4989_v28  ;;  %v1725_v8 = vrot.slane %v1711_v15, %v4447_v0  ;;  %v1989_v54 = vrot.slane %v1975_v17, %v4447_v0 }
 0x22a   : > { %v1991_v44 = vcombine.high %v1989_v54, %v1989_v54 }
 0x22b   : > { %v5001_v39 = vpop.permute.xlu1 %881  ;;  %v5009_v50 = vpop.permute.xlu0 %879 }
 0x22f   : > { %v1172_v27 = vpop.permute.xlu1 %1171  ;;  %v1140_v49 = vpop.permute.xlu0 %1139 }
 0x230   : > { %v1474_v6 = vsel %vm1448_vm9, %v1441_v25, %v1172_v27  ;;  %v1458_v37 = vsel %vm1448_vm9, %v1425_v62, %v1140_v49  ;;  %v1361_v25 = vsel %vm1349_vm6, %v1328_v56, %v4991_v55  ;;  %v5533_v27 = vld [vmem:[#allocation62_spill] sm:$0xff]  ;;  %v5534_v62 = vld [vmem:[#allocation24_spill] sm:$0xff] }
 0x231   : > { %v1507_v21 = vsel %vm1481_vm10, %v1474_v6, 0.0  ;;  %v1491_v24 = vsel %vm1481_vm10, %v1458_v37, 0.0  ;;  %v1345_v57 = vsel %vm1316_vm5, %v5533_v27, %v4985_v10  ;;  %v1344_v6 = vsel %vm1316_vm5, %v5534_v62, %v4987_v46 }
 0x232   : > { %v1959_v41 = vcombine.high %v1507_v21, %v1507_v21  ;;  %v1966_v53 = vrot.slane %v1507_v21, %v4447_v0  ;;  %v1695_v32 = vcombine.high %v1491_v24, %v1491_v24  ;;  %v1702_v33 = vrot.slane %v1491_v24, %v4447_v0 }
 0x233   : > { %v5034_v7 = vpop.permute.xlu1 %784  ;;  %v1726_v21 = vcombine.high %v1718_v16, %v1718_v16  ;;  %v1990_v10 = vcombine.high %v5037_v34, %v5037_v34 }
 0x234   : > { %v1973_v4 = vrot.slane %v1959_v41, %v4447_v0  ;;  %v1974_v14 = vcombine.high %v1966_v53, %v1966_v53  ;;  %v5040_v60 = vpop.permute.xlu0 %752  ;;  %v1709_v22 = vrot.slane %v1695_v32, %v4447_v0  ;;  %v1710_v58 = vcombine.high %v1702_v33, %v1702_v33 }
 0x235   : > { %v1378_v41 = vsel %vm1349_vm6, %v1345_v57, %v5001_v39 }
 0x236   : > { %v2448_v36 = vcombine.low %v1966_v53, %v1974_v14  ;;  %v2449_v43 = vcombine.low %v1973_v4, %v5037_v34  ;;  %v2210_v3 = vcombine.low %v1702_v33, %v1710_v58  ;;  %v2211_v35 = vcombine.low %v1709_v22, %v1718_v16 }
 0x237   : > { %v948_v45 = vpop.permute.xlu1 %947  ;;  %v1727_v33 = vcombine.high %v1725_v8, %v1725_v8  ;;  %v1377_v14 = vsel %vm1349_vm6, %v1344_v6, %v5009_v50  ;;  %v2227_v58 = vcombine.low %v1726_v21, %v1725_v8 }
 0x238   : > { %v946_v38 = vpop.permute.xlu0 %945  ;;  %v2456_v40 = vrot.slane %v2448_v36, %v4447_v0  ;;  %v2463_v48 = vrot.slane %v2449_v43, %v4447_v0  ;;  %v2218_v47 = vrot.slane %v2210_v3, %v4447_v0  ;;  %v2225_v52 = vrot.slane %v2211_v35, %v4447_v0 }
 0x239   : > { %v1395_v20 = vsel %vm1382_vm7, %v1362_v30, %v948_v45  ;;  %v1394_v23 = vsel %vm1382_vm7, %v1361_v25, %v946_v38  ;;  %v2235_v12 = vrot.slane %v2227_v58, %v4447_v0 }
 0x23a   : > { %v2464_v59 = vcombine.low %v2456_v40, %v2463_v48  ;;  %v2226_v13 = vcombine.low %v2218_v47, %v2225_v52 }
 0x23b   : > { %v980_v2 = vpop.permute.xlu1 %979 }
 0x23c   : > { %v978_v18 = vpop.permute.xlu0 %977  ;;  %3129 = vmatprep.mubr.f32.mxu1 %v2464_v59  ;;  %3108 = vmatprep.mubr.f32.mxu0 %v2226_v13  ;;  %v1411_v24 = vsel %vm1382_vm7, %v1378_v41, %v980_v2  ;;  %v5130_v41 = vld [vmem:[%s5287_s3] ss:$0 sm:$0xff] }
 0x23d   : > { %v1410_v36 = vsel %vm1382_vm7, %v1377_v14, %v978_v18 }
 0x23f   : > { %v5049_v61 = vpop.permute.xlu1 %883 }
 0x240   : > { %v5051_v63 = vpop.permute.xlu0 %851 }
 0x243   : > { %v1047_v51 = vpop.permute.xlu1 %1046 }
 0x244   : > { %v1045_v9 = vpop.permute.xlu0 %1044  ;;  %v1428_v49 = vsel %vm1415_vm8, %v1395_v20, %v1047_v51  ;;  %v2465_v51 = vcombine.low %v1990_v10, %v1989_v54 }
 0x245   : > { %v1427_v55 = vsel %vm1415_vm8, %v1394_v23, %v1045_v9 }
 0x246   : > { %v2473_v6 = vrot.slane %v2465_v51, %v4447_v0 }
 0x247   : > { %v1079_v11 = vpop.permute.xlu1 %1078 }
 0x248   : > { %v1077_v1 = vpop.permute.xlu0 %1076  ;;  %v1444_v34 = vsel %vm1415_vm8, %v1411_v24, %v1079_v11 }
 0x249   : > { %v1443_v50 = vsel %vm1415_vm8, %v1410_v36, %v1077_v1  ;;  %v5536_v36 = vld [vmem:[#allocation10_spill] sm:$0xff] }
 0x24b   : > { %v5053_v42 = vpop.permute.xlu1 %786 }
 0x24c   : > { %v5055_v29 = vpop.permute.xlu0 %754 }
 0x24f   : > { %v5057_v5 = vpop.permute.xlu1 %981 }
 0x250   : > { %v5062_v19 = vpop.permute.xlu0 %949 }
 0x253   : > { %v1146_v28 = vpop.permute.xlu1 %1145 }
 0x254   : > { %v1461_v37 = vsel %vm1448_vm9, %v1428_v49, %v1146_v28  ;;  %v1144_v26 = vpop.permute.xlu0 %1143 }
 0x255   : > { %v5089_v46 = vsel %vm1481_vm10, %v1461_v37, 0.0  ;;  %v1460_v53 = vsel %vm1448_vm9, %v1427_v55, %v1144_v26 }
 0x256   : > { %v1751_v32 = vrot.slane %v5089_v46, %v4447_v0  ;;  %v1493_v4 = vsel %vm1481_vm10, %v1460_v53, 0.0  ;;  %v1744_v53 = vcombine.high %v5089_v46, %v5089_v46 }
 0x257   : > { %v1728_v16 = vcombine.high %v1493_v4, %v1493_v4  ;;  %v1735_v39 = vrot.slane %v1493_v4, %v4447_v0  ;;  %v1178_v22 = vpop.permute.xlu1 %1177 }
 0x258   : > { %v1759_v43 = vcombine.high %v1751_v32, %v1751_v32  ;;  %v1477_v3 = vsel %vm1448_vm9, %v1444_v34, %v1178_v22  ;;  %v1176_v35 = vpop.permute.xlu0 %1175  ;;  %v5535_v34 = vld [vmem:[#allocation61_spill] sm:$0xff] }
 0x259   : > { %v1742_v45 = vrot.slane %v1728_v16, %v4447_v0  ;;  %v1743_v38 = vcombine.high %v1735_v39, %v1735_v39  ;;  %v2228_v40 = vcombine.low %v1727_v33, %v1735_v39  ;;  %v1510_v48 = vsel %vm1481_vm10, %v1477_v3, 0.0 }
 0x25a   : > { %v2015_v47 = vrot.slane %v1510_v48, %v4447_v0  ;;  %v2245_v52 = vcombine.low %v1751_v32, %v1759_v43  ;;  %v1476_v2 = vsel %vm1448_vm9, %v1443_v50, %v1176_v35  ;;  %v2008_v26 = vcombine.high %v1510_v48, %v1510_v48 }
 0x25b   : > { %v2244_v59 = vcombine.low %v1743_v38, %v1742_v45  ;;  %v5107_v13 = vpop.permute.xlu1 %885  ;;  %v2242_v18 = vrot.slane %v2228_v40, %v4447_v0  ;;  %v1509_v11 = vsel %vm1481_vm10, %v1476_v2, 0.0  ;;  %v1346_v16 = vsel %vm1316_vm5, %v5535_v34, %v5034_v7 }
 0x25c   : > { %v2023_v9 = vcombine.high %v2015_v47, %v2015_v47  ;;  %v5111_v15 = vpop.permute.xlu0 %853  ;;  %v1992_v1 = vcombine.high %v1509_v11, %v1509_v11  ;;  %v1999_v17 = vrot.slane %v1509_v11, %v4447_v0  ;;  %v2259_v57 = vrot.slane %v2245_v52, %v4447_v0 }
 0x25d   : > { %v2243_v56 = vcombine.low %v2235_v12, %v2242_v18  ;;  %v2252_v30 = vrot.slane %v2244_v59, %v4447_v0  ;;  %v2022_v46 = vrot.slane %v2008_v26, %v4447_v0  ;;  %v1330_v43 = vsel %vm1316_vm5, %v5536_v36, %v5040_v60 }
 0x25e   : > { %v2483_v31 = vcombine.low %v2015_v47, %v2023_v9  ;;  %v2006_v8 = vrot.slane %v1992_v1, %v4447_v0  ;;  %v2007_v25 = vcombine.high %v1999_v17, %v1999_v17  ;;  %v2466_v20 = vcombine.low %v1991_v44, %v1999_v17 }
 0x25f   : > { %v1081_v27 = vpop.permute.xlu1 %1080  ;;  %3109 = vmatmul.mubr.f32.gmra.mxu0 %v2243_v56  ;;  %v2260_v49 = vcombine.low %v2252_v30, %v2259_v57  ;;  %v1379_v3 = vsel %vm1349_vm6, %v1346_v16, %v5049_v61  ;;  %v1758_v35 = vrot.slane %v1744_v53, %v4447_v0  ;;  %v1363_v38 = vsel %vm1349_vm6, %v1330_v43, %v5051_v63 }
 0x260   : > { %v1049_v62 = vpop.permute.xlu0 %1048  ;;  %v2482_v23 = vcombine.low %v2007_v25, %v2006_v8  ;;  %v2480_v28 = vrot.slane %v2466_v20, %v4447_v0  ;;  %v2497_v54 = vrot.slane %v2483_v31, %v4447_v0  ;;  %v1412_v40 = vsel %vm1382_vm7, %v1379_v3, %v5057_v5 }
 0x261   : > { %3111 = vmatprep.mubr.f32.mxu0 %v2260_v49  ;;  %v1396_v60 = vsel %vm1382_vm7, %v1363_v38, %v5062_v19  ;;  %v1445_v61 = vsel %vm1415_vm8, %v1412_v40, %v1081_v27  ;;  %v2024_v47 = vcombine.high %v2022_v46, %v2022_v46  ;;  %v1760_v2 = vcombine.high %v1758_v35, %v1758_v35 }
 0x262   : > { %v2481_v21 = vcombine.low %v2473_v6, %v2480_v28  ;;  %v2490_v37 = vrot.slane %v2482_v23, %v4447_v0  ;;  %v1429_v52 = vsel %vm1415_vm8, %v1396_v60, %v1049_v62  ;;  %v5537_v28 = vld [vmem:[#allocation41_spill] sm:$0xff] }
 0x263   : > { %v5122_v55 = vpop.permute.xlu1 %788  ;;  %v2499_v12 = vcombine.low %v2022_v46, %v2024_v47  ;;  %v2261_v17 = vcombine.low %v1758_v35, %v1760_v2  ;;  %v5540_v35 = vld [vmem:[#allocation60_spill] sm:$0xff] }
 0x264   : > { %v5125_v10 = vpop.permute.xlu0 %756  ;;  %3130 = vmatmul.mubr.f32.gmra.mxu1 %v2481_v21  ;;  %v2498_v24 = vcombine.low %v2490_v37, %v2497_v54  ;;  %v1347_v54 = vsel %vm1316_vm5, %v5537_v28, %v5053_v42  ;;  %v5538_v37 = vld [vmem:[#allocation15_spill] sm:$0xff] }
 0x265   : > { %v2507_v20 = vrot.slane %v2499_v12, %v4447_v0  ;;  %v2269_v57 = vrot.slane %v2261_v17, %v4447_v0  ;;  %v1331_v26 = vsel %vm1316_vm5, %v5538_v37, %v5055_v29  ;;  %v1380_v53 = vsel %vm1349_vm6, %v1347_v54, %v5107_v13  ;;  %v5539_v13 = vld [vmem:[#allocation18_spill] sm:$0xff] }
 0x266   : > { %v3119_v32 = vpop.f32.mrf.mxu1  ;;  %3132 = vmatprep.mubr.f32.mxu1 %v2498_v24  ;;  %v3098_v33 = vpop.f32.mrf.mxu0  ;;  %v1364_v24 = vsel %vm1349_vm6, %v1331_v26, %v5111_v15 }
 0x267   : > { %v2799_v4 = vadd.f32 %v3119_v32, %v5130_v41  ;;  %v984_v14 = vpop.permute.xlu1 %983  ;;  %v2729_v39 = vadd.f32 %v3098_v33, %v5130_v41 }
 0x268   : > { %v952_v22 = vpop.permute.xlu0 %951  ;;  %v2793_v58 = vpop.f32.mrf.mxu1  ;;  %v1413_v32 = vsel %vm1382_vm7, %v1380_v53, %v984_v14 }
 0x269   : > { %2877 = vst [vmem:[%s5137_s28 + $0x78] sm:$0xff] %v2799_v4  ;;  %v2723_v45 = vpop.f32.mrf.mxu0  ;;  %v2794_v7 = vadd.f32 %v5130_v41, %v2793_v58  ;;  %2863 = vst [vmem:[%s5137_s28 + $0x8] sm:$0xff] %v2729_v39  ;;  %v1397_v4 = vsel %vm1382_vm7, %v1364_v24, %v952_v22  ;;  %v1348_v58 = vsel %vm1316_vm5, %v5539_v13, %v5122_v55 }
 0x26a   : > { %v2724_v48 = vadd.f32 %v5130_v41, %v2723_v45  ;;  %v1332_v45 = vsel %vm1316_vm5, %v5540_v35, %v5125_v10 }
 0x26b   : > { %2876 = vst [vmem:[%s5137_s28 + $0x70] sm:$0xff] %v2794_v7  ;;  %v1180_v50 = vpop.permute.xlu1 %1179 }
 0x26c   : > { %2862 = vst [vmem:[%s5137_s28] sm:$0xff] %v2724_v48  ;;  %v1478_v59 = vsel %vm1448_vm9, %v1445_v61, %v1180_v50  ;;  %v1148_v63 = vpop.permute.xlu0 %1147 }
 0x26d   : > { %v1511_v5 = vsel %vm1481_vm10, %v1478_v59, 0.0  ;;  %v1462_v18 = vsel %vm1448_vm9, %v1429_v52, %v1148_v63 }
 0x26e   : > { %v2032_v51 = vrot.slane %v1511_v5, %v4447_v0  ;;  %v1495_v19 = vsel %vm1481_vm10, %v1462_v18, 0.0  ;;  %v2025_v33 = vcombine.high %v1511_v5, %v1511_v5 }
 0x26f   : > { %v1768_v9 = vrot.slane %v1495_v19, %v4447_v0  ;;  %v888_v11 = vpop.permute.xlu1 %887  ;;  %v1761_v34 = vcombine.high %v1495_v19, %v1495_v19 }
 0x270   : > { %v2040_v44 = vcombine.high %v2032_v51, %v2032_v51  ;;  %v856_v1 = vpop.permute.xlu0 %855  ;;  %v2039_v36 = vrot.slane %v2025_v33, %v4447_v0  ;;  %v1381_v48 = vsel %vm1349_vm6, %v1348_v58, %v888_v11 }
 0x271   : > { %v1776_v31 = vcombine.high %v1768_v9, %v1768_v9  ;;  %v1775_v7 = vrot.slane %v1761_v34, %v4447_v0  ;;  %v1365_v52 = vsel %vm1349_vm6, %v1332_v45, %v856_v1 }
 0x272   : > { %v2500_v56 = vcombine.low %v2032_v51, %v2040_v44 }
 0x273   : > { %v2262_v30 = vcombine.low %v1768_v9, %v1776_v31  ;;  %v1083_v8 = vpop.permute.xlu1 %1082 }
 0x274   : > { %v1051_v25 = vpop.permute.xlu0 %1050  ;;  %v2514_v27 = vrot.slane %v2500_v56, %v4447_v0  ;;  %v1446_v42 = vsel %vm1415_vm8, %v1413_v32, %v1083_v8 }
 0x275   : > { %v2276_v62 = vrot.slane %v2262_v30, %v4447_v0  ;;  %v1430_v46 = vsel %vm1415_vm8, %v1397_v4, %v1051_v25 }
 0x276   : > { %v2515_v6 = vcombine.low %v2507_v20, %v2514_v27 }
 0x277   : > { %v986_v23 = vpop.permute.xlu1 %985  ;;  %v2277_v49 = vcombine.low %v2269_v57, %v2276_v62 }
 0x278   : > { %v954_v21 = vpop.permute.xlu0 %953  ;;  %3133 = vmatmul.mubr.f32.gmra.mxu1 %v2515_v6  ;;  %v1414_v10 = vsel %vm1382_vm7, %v1381_v48, %v986_v23 }
 0x279   : > { %3112 = vmatmul.mubr.f32.gmra.mxu0 %v2277_v49  ;;  %v1398_v5 = vsel %vm1382_vm7, %v1365_v52, %v954_v21 }
 0x27b   : > { %v1182_v16 = vpop.permute.xlu1 %1181 }
 0x27c   : > { %v1479_v29 = vsel %vm1448_vm9, %v1446_v42, %v1182_v16  ;;  %v1150_v39 = vpop.permute.xlu0 %1149 }
 0x27d   : > { %v1512_v15 = vsel %vm1481_vm10, %v1479_v29, 0.0  ;;  %v1463_v14 = vsel %vm1448_vm9, %v1430_v46, %v1150_v39 }
 0x27e   : > { %v2041_v22 = vcombine.high %v1512_v15, %v1512_v15  ;;  %v2048_v43 = vrot.slane %v1512_v15, %v4447_v0  ;;  %v1496_v3 = vsel %vm1481_vm10, %v1463_v14, 0.0 }
 0x27f   : > { %v1777_v38 = vcombine.high %v1496_v3, %v1496_v3  ;;  %v1784_v55 = vrot.slane %v1496_v3, %v4447_v0  ;;  %v1085_v40 = vpop.permute.xlu1 %1084 }
 0x280   : > { %v2055_v60 = vrot.slane %v2041_v22, %v4447_v0  ;;  %v2056_v61 = vcombine.high %v2048_v43, %v2048_v43  ;;  %v2516_v50 = vcombine.low %v2039_v36, %v2048_v43  ;;  %v1053_v47 = vpop.permute.xlu0 %1052  ;;  %v1447_v19 = vsel %vm1415_vm8, %v1414_v10, %v1085_v40 }
 0x281   : > { %v1791_v59 = vrot.slane %v1777_v38, %v4447_v0  ;;  %v1792_v63 = vcombine.high %v1784_v55, %v1784_v55  ;;  %v2278_v2 = vcombine.low %v1775_v7, %v1784_v55  ;;  %v1431_v9 = vsel %vm1415_vm8, %v1398_v5, %v1053_v47 }
 0x282   : > { %v2517_v18 = vcombine.low %v2056_v61, %v2055_v60  ;;  %v2057_v44 = vcombine.high %v2055_v60, %v2055_v60  ;;  %v2524_v1 = vrot.slane %v2516_v50, %v4447_v0 }
 0x283   : > { %v2279_v51 = vcombine.low %v1792_v63, %v1791_v59  ;;  %v1184_v11 = vpop.permute.xlu1 %1183  ;;  %v2286_v8 = vrot.slane %v2278_v2, %v4447_v0  ;;  %v1793_v6 = vcombine.high %v1791_v59, %v1791_v59 }
 0x284   : > { %v1480_v12 = vsel %vm1448_vm9, %v1447_v19, %v1184_v11  ;;  %v1152_v17 = vpop.permute.xlu0 %1151  ;;  %v2531_v31 = vrot.slane %v2517_v18, %v4447_v0  ;;  %v3101_v28 = vpop.f32.mrf.mxu0 }
 0x285   : > { %v1513_v56 = vsel %vm1481_vm10, %v1480_v12, 0.0  ;;  %v1464_v30 = vsel %vm1448_vm9, %v1431_v9, %v1152_v17  ;;  %v2293_v25 = vrot.slane %v2279_v51, %v4447_v0  ;;  %v2739_v53 = vadd.f32 %v3101_v28, %v5130_v41 }
 0x286   : > { %v2058_v20 = vcombine.high %v1513_v56, %v1513_v56  ;;  %v2065_v27 = vrot.slane %v1513_v56, %v4447_v0  ;;  %v1497_v57 = vsel %vm1481_vm10, %v1464_v30, 0.0  ;;  %v2532_v62 = vcombine.low %v2524_v1, %v2531_v31  ;;  %v2733_v4 = vpop.f32.mrf.mxu0 }
 0x287   : > { %v1794_v23 = vcombine.high %v1497_v57, %v1497_v57  ;;  %v1801_v49 = vrot.slane %v1497_v57, %v4447_v0  ;;  %v2294_v54 = vcombine.low %v2286_v8, %v2293_v25  ;;  %2865 = vst [vmem:[%s5137_s28 + $0x18] sm:$0xff] %v2739_v53  ;;  %v2734_v42 = vadd.f32 %v5130_v41, %v2733_v4 }
 0x288   : > { %v2072_v21 = vrot.slane %v2058_v20, %v4447_v0  ;;  %v2073_v37 = vcombine.high %v2065_v27, %v2065_v27  ;;  %v2533_v26 = vcombine.low %v2057_v44, %v2065_v27  ;;  %3135 = vmatprep.mubr.f32.mxu1 %v2532_v62 }
 0x289   : > { %v1808_v24 = vrot.slane %v1794_v23, %v4447_v0  ;;  %v1809_v32 = vcombine.high %v1801_v49, %v1801_v49  ;;  %v2295_v33 = vcombine.low %v1793_v6, %v1801_v49  ;;  %3114 = vmatprep.mubr.f32.mxu0 %v2294_v54  ;;  %v3122_v16 = vpop.f32.mrf.mxu1  ;;  %2864 = vst [vmem:[%s5137_s28 + $0x10] sm:$0xff] %v2734_v42 }
 0x28a   : > { %v2534_v34 = vcombine.low %v2073_v37, %v2072_v21  ;;  %v2809_v29 = vadd.f32 %v3122_v16, %v5130_v41  ;;  %v2541_v13 = vrot.slane %v2533_v26, %v4447_v0 }
 0x28b   : > { %v2296_v46 = vcombine.low %v1809_v32, %v1808_v24  ;;  %v2803_v39 = vpop.f32.mrf.mxu1  ;;  %v2303_v14 = vrot.slane %v2295_v33, %v4447_v0 }
 0x28c   : > { %v2548_v58 = vrot.slane %v2534_v34, %v4447_v0  ;;  %2879 = vst [vmem:[%s5137_s28 + $0x88] sm:$0xff] %v2809_v29  ;;  %v2804_v15 = vadd.f32 %v5130_v41, %v2803_v39 }
 0x28d   : > { %v2310_v36 = vrot.slane %v2296_v46, %v4447_v0 }
 0x28e   : > { %v2549_v22 = vcombine.low %v2541_v13, %v2548_v58  ;;  %2878 = vst [vmem:[%s5137_s28 + $0x80] sm:$0xff] %v2804_v15 }
 0x28f   : > { %v2311_v43 = vcombine.low %v2303_v14, %v2310_v36 }
 0x290   : > { %3136 = vmatmul.mubr.f32.gmra.mxu1 %v2549_v22 }
 0x291   : > { %3115 = vmatmul.mubr.f32.gmra.mxu0 %v2311_v43 }
 0x2b4   : > { %v3125_v3 = vpop.f32.mrf.mxu1 }
 0x2b5   : > { %v3104_v35 = vpop.f32.mrf.mxu0  ;;  %v2819_v45 = vadd.f32 %v3125_v3, %v5130_v41 }
 0x2b6   : > { %v2749_v7 = vadd.f32 %v3104_v35, %v5130_v41  ;;  %v2813_v38 = vpop.f32.mrf.mxu1 }
 0x2b7   : > { %2881 = vst [vmem:[%s5137_s28 + $0x98] sm:$0xff] %v2819_v45  ;;  %v2743_v55 = vpop.f32.mrf.mxu0  ;;  %v2814_v0 = vadd.f32 %v5130_v41, %v2813_v38 }
 0x2b8   : > { %2867 = vst [vmem:[%s5137_s28 + $0x28] sm:$0xff] %v2749_v7  ;;  %v2744_v40 = vadd.f32 %v5130_v41, %v2743_v55 }
 0x2b9   : > { %2880 = vst [vmem:[%s5137_s28 + $0x90] sm:$0xff] %v2814_v0 }
 0x2ba   : > { %2866 = vst [vmem:[%s5137_s28 + $0x20] sm:$0xff] %v2744_v40 }
 0x2d2   : > { %v3107_v48 = vpop.f32.mrf.mxu0 }
 0x2d3   : > { %v2759_v60 = vadd.f32 %v3107_v48, %v5130_v41  ;;  %v3128_v61 = vpop.f32.mrf.mxu1 }
 0x2d4   : > { %v2829_v50 = vadd.f32 %v3128_v61, %v5130_v41  ;;  %v2753_v47 = vpop.f32.mrf.mxu0 }
 0x2d5   : > { %2869 = vst [vmem:[%s5137_s28 + $0x38] sm:$0xff] %v2759_v60  ;;  %v2754_v52 = vadd.f32 %v5130_v41, %v2753_v47  ;;  %v2823_v59 = vpop.f32.mrf.mxu1 }
 0x2d6   : > { %2883 = vst [vmem:[%s5137_s28 + $0xa8] sm:$0xff] %v2829_v50  ;;  %v2824_v63 = vadd.f32 %v5130_v41, %v2823_v59 }
 0x2d7   : > { %2868 = vst [vmem:[%s5137_s28 + $0x30] sm:$0xff] %v2754_v52 }
 0x2d8   : > { %2882 = vst [vmem:[%s5137_s28 + $0xa0] sm:$0xff] %v2824_v63 }
 0x31f   : > { %v3110_v2 = vpop.f32.mrf.mxu0 }
 0x320   : > { %v2769_v10 = vadd.f32 %v3110_v2, %v5130_v41 }
 0x321   : > { %v2763_v5 = vpop.f32.mrf.mxu0 }
 0x322   : > { %2871 = vst [vmem:[%s5137_s28 + $0x48] sm:$0xff] %v2769_v10  ;;  %v2764_v18 = vadd.f32 %v5130_v41, %v2763_v5 }
 0x324   : > { %2870 = vst [vmem:[%s5137_s28 + $0x40] sm:$0xff] %v2764_v18  ;;  %v3131_v51 = vpop.f32.mrf.mxu1 }
 0x325   : > { %v2839_v19 = vadd.f32 %v3131_v51, %v5130_v41 }
 0x326   : > { %v2833_v9 = vpop.f32.mrf.mxu1 }
 0x327   : > { %2885 = vst [vmem:[%s5137_s28 + $0xb8] sm:$0xff] %v2839_v19  ;;  %v2834_v11 = vadd.f32 %v5130_v41, %v2833_v9 }
 0x329   : > { %2884 = vst [vmem:[%s5137_s28 + $0xb0] sm:$0xff] %v2834_v11 }
 0x338   : > { %v3134_v12 = vpop.f32.mrf.mxu1 }
 0x339   : > { %v3113_v44 = vpop.f32.mrf.mxu0  ;;  %v2849_v17 = vadd.f32 %v3134_v12, %v5130_v41 }
 0x33a   : > { %v2779_v1 = vadd.f32 %v3113_v44, %v5130_v41  ;;  %v2843_v31 = vpop.f32.mrf.mxu1 }
 0x33b   : > { %2887 = vst [vmem:[%s5137_s28 + $0xc8] sm:$0xff] %v2849_v17  ;;  %v2773_v56 = vpop.f32.mrf.mxu0  ;;  %v2844_v30 = vadd.f32 %v5130_v41, %v2843_v31 }
 0x33c   : > { %2873 = vst [vmem:[%s5137_s28 + $0x58] sm:$0xff] %v2779_v1  ;;  %v2774_v8 = vadd.f32 %v5130_v41, %v2773_v56 }
 0x33d   : > { %2886 = vst [vmem:[%s5137_s28 + $0xc0] sm:$0xff] %v2844_v30 }
 0x33e   : > { %2872 = vst [vmem:[%s5137_s28 + $0x50] sm:$0xff] %v2774_v8 }
 0x350   : > { %v3137_v25 = vpop.f32.mrf.mxu1 }
 0x351   : > { %v3116_v20 = vpop.f32.mrf.mxu0  ;;  %v2859_v27 = vadd.f32 %v3137_v25, %v5130_v41 }
 0x352   : > { %v2789_v57 = vadd.f32 %v3116_v20, %v5130_v41  ;;  %v2853_v62 = vpop.f32.mrf.mxu1 }
 0x353   : > { %2889 = vst [vmem:[%s5137_s28 + $0xd8] sm:$0xff] %v2859_v27  ;;  %v2783_v6 = vpop.f32.mrf.mxu0  ;;  %v2854_v23 = vadd.f32 %v5130_v41, %v2853_v62 }
 0x354   : > { %2875 = vst [vmem:[%s5137_s28 + $0x68] sm:$0xff] %v2789_v57  ;;  %v2784_v49 = vadd.f32 %v5130_v41, %v2783_v6 }
 0x355   : > { %2888 = vst [vmem:[%s5137_s28 + $0xd0] sm:$0xff] %v2854_v23 }
 0x356   : > { %2874 = vst [vmem:[%s5137_s28 + $0x60] sm:$0xff] %v2784_v49 }
 0x357 PF: > { %s14_s17 = sadd.s32 1, %s3248_s17   ;;  %s5541_s15 = smov %s3244_s16 }
 0x358   : > { %p11_p5 = scmp.ge.s32.totalorder %s14_s17, 4   ;;  %s5542_s16 = smov %s5544_s2 }
 0x35a   :  { %13 = sbr.rel (!%p11_p5) target bundleno = 2 (0x2), region = 79 }

</bundles_post_ra>
